<compile_context>
chip_gen: v6e
topology: v6e:2x2x1
jax: 0.10.0
libtpu: 0.0.40
codegen_flags: <defaults>
</compile_context>

<pallas_src>
import functools

import jax
import jax.numpy as jnp
from jax import lax
from jax.experimental import pallas as pl
from jax.experimental.pallas import tpu as pltpu


def _cdiv(a, b):
    return -(-a // b)


def _round_up(x, m):
    return _cdiv(x, m) * m


def _extract_kernel(x_ref, out_ref, *, obj_ch, cls_ch, tgt_ch):
    """x_ref: (tn, C) tile of flattened [B*N, C] rows; out_ref: (3, tn).

    Row r of the one-hot selector picks channel {obj_ch, cls_ch, tgt_ch}[r];
    the (8, C) @ (tn, C)^T matmul both extracts the 3 channels and performs the
    rows(sublane) -> lanes relayout on the MXU, so the output is lane-dense.
    """
    _, C = x_ref.shape

    # Build the one-hot selector in-kernel (static channel ids -> no array
    # constant, no extra pipelined input).  Tiny: one (8, C) vreg of VPU work.
    row = lax.broadcasted_iota(jnp.int32, (8, C), 0)
    col = lax.broadcasted_iota(jnp.int32, (8, C), 1)
    hot = (((row == 0) & (col == obj_ch))
           | ((row == 1) & (col == cls_ch))
           | ((row == 2) & (col == tgt_ch)))

    dn = (((1,), (1,)), ((), ()))                     # contract over C (A @ B^T)
    x = x_ref[...]

    if x_ref.dtype == jnp.bfloat16:
        # bf16 fast path: 0/1 selector is exact in bf16, accumulate in f32.
        acc = lax.dot_general(hot.astype(jnp.bfloat16), x, dn,
                              preferred_element_type=jnp.float32)
    else:
        # f32 path: HIGHEST precision does the multi-pass bf16 decomposition
        # inside the MXU lowering (exact for a 0/1 selector on finite inputs),
        # with no vreg-resident split temporaries.
        acc = lax.dot_general(hot.astype(jnp.float32), x.astype(jnp.float32), dn,
                              preferred_element_type=jnp.float32,
                              precision=lax.Precision.HIGHEST)

    out_ref[...] = acc[:3, :].astype(out_ref.dtype)   # one dense (3, tn) store


def _pick_row_tile(M, C, itemsize, vmem_input_budget=12 << 20):
    """Largest lane-aligned row tile whose double-buffered, lane-padded input
    footprint fits the budget; prefers an even grid-step count (v7x 2 TCs)."""
    padded_c = _round_up(C, 128)
    per_row = 2 * padded_c * itemsize                 # double-buffered bytes/row
    tn_cap = max(128, (vmem_input_budget // per_row) // 128 * 128)
    full = _round_up(M, 128)
    if full <= tn_cap:
        return full                                   # single grid step
    steps = 2
    while _round_up(_cdiv(M, steps), 128) > tn_cap:
        steps += 2
    return _round_up(_cdiv(M, steps), 128)


def max_prob_extractor(yolo_output, *, cls_id=0, tgt_cls_id=1, num_cls=80,
                       anchor_tile=None):
    """yolo_output: [B, N, 5 + num_cls] (PyTorch layout).  Returns three [B, N]."""
    B, N, C = yolo_output.shape
    if C != 5 + num_cls:
        raise ValueError(f"expected last dim {5 + num_cls}, got {C}")
    if not (0 <= cls_id < num_cls):
        raise ValueError(f"cls_id {cls_id} out of range [0, {num_cls})")
    if not (0 <= tgt_cls_id < num_cls):
        raise ValueError(f"tgt_cls_id {tgt_cls_id} out of range [0, {num_cls})")

    itemsize = jnp.dtype(yolo_output.dtype).itemsize
    M = B * N
    x2d = yolo_output.reshape(M, C)                   # free, contiguous reshape

    if anchor_tile is not None:
        tn = min(_round_up(anchor_tile, 128), _round_up(M, 128))
    else:
        tn = _pick_row_tile(M, C, itemsize)
    grid = (pl.cdiv(M, tn),)                          # partial tail block masked

    padded_c = _round_up(C, 128)
    vmem_limit = (2 * tn * padded_c * itemsize        # double-buffered input
                  + 2 * 8 * tn * itemsize             # double-buffered output
                  + (4 << 20))                        # headroom
    cost = pl.CostEstimate(
        flops=2 * 8 * C * M,
        transcendentals=0,
        bytes_accessed=M * C * itemsize + 3 * M * itemsize,
    )

    out = pl.pallas_call(
        functools.partial(_extract_kernel, obj_ch=4, cls_ch=5 + cls_id,
                          tgt_ch=5 + tgt_cls_id),
        out_shape=jax.ShapeDtypeStruct((3, M), yolo_output.dtype),
        grid_spec=pltpu.PrefetchScalarGridSpec(
            num_scalar_prefetch=0,
            grid=grid,
            in_specs=[pl.BlockSpec((tn, C), lambda i: (i, 0))],   # contiguous rows
            out_specs=pl.BlockSpec((3, tn), lambda i: (0, i)),    # lane-dense out
        ),
        compiler_params=pltpu.CompilerParams(
            dimension_semantics=("parallel",),        # rows shard over TCs (v7x)
            vmem_limit_bytes=int(vmem_limit)),
        cost_estimate=cost,
    )(x2d)

    out3 = out.reshape(3, B, N)                       # free, contiguous reshape
    return out3[0], out3[1], out3[2]


def _reference(yolo_output, cls_id, tgt_cls_id, num_cls):
    obj = yolo_output[:, :, 4]
    cls_all = yolo_output[:, :, 5:5 + num_cls]
    return obj, cls_all[:, :, cls_id], cls_all[:, :, tgt_cls_id]


def _check(x, cls_id, tgt_cls_id, num_cls, **kw):
    obj, cls_p, tgt_p = max_prob_extractor(
        x, cls_id=cls_id, tgt_cls_id=tgt_cls_id, num_cls=num_cls, **kw)
    jax.block_until_ready((obj, cls_p, tgt_p))
    r_obj, r_cls, r_tgt = _reference(x, cls_id, tgt_cls_id, num_cls)
    B, N, _ = x.shape
    assert obj.shape == (B, N) and cls_p.shape == (B, N) and tgt_p.shape == (B, N)
    assert jnp.allclose(obj.astype(jnp.float32), r_obj.astype(jnp.float32),
                        rtol=1e-6, atol=1e-6)
    assert jnp.allclose(cls_p.astype(jnp.float32), r_cls.astype(jnp.float32),
                        rtol=1e-6, atol=1e-6)
    assert jnp.allclose(tgt_p.astype(jnp.float32), r_tgt.astype(jnp.float32),
                        rtol=1e-6, atol=1e-6)


if __name__ == "__main__":
    NUM_CLS = 80
    key = jax.random.PRNGKey(0)
    k1, k2 = jax.random.split(key)

    # Small demo shape: batch=2, anchors=256 -> single grid step, no padding.
    x1 = jax.random.normal(k1, (2, 256, 5 + NUM_CLS), dtype=jnp.float32)
    _check(x1, cls_id=0, tgt_cls_id=1, num_cls=NUM_CLS)

    # Ragged flattened row count exercising multi-step grid + masked tail block
    # (M = 2*640 = 1280 rows, tile 512 -> 3 grid steps, last step 256 valid rows).
    x2 = jax.random.normal(k2, (2, 640, 5 + NUM_CLS), dtype=jnp.float32)
    _check(x2, cls_id=7, tgt_cls_id=33, num_cls=NUM_CLS, anchor_tile=512)

    # bf16 fast path (single bf16 matmul, exact 0/1 selector).
    _check(x1.astype(jnp.bfloat16), cls_id=0, tgt_cls_id=1, num_cls=NUM_CLS)

    print("KERNEL_OK")
</pallas_src>

<mosaic_0001>
module attributes {stable_mosaic.version = 11 : i64} {
  func.func @_extract_kernel(%arg0: i32, %arg1: memref<512x85xf32, #tpu.memory_space<vmem>>, %arg2: memref<3x512xf32, #tpu.memory_space<vmem>>) attributes {dimension_semantics = [#tpu.dimension_semantics<parallel>], iteration_bounds = array<i64: 1>, scalar_prefetch = 0 : i64, scratch_operands = 0 : i64, tpu.core_type = #tpu.core_type<tc>, window_params = [{transform_indices = @transform_0, window_bounds = array<i64: 512, 85>}, {transform_indices = @transform_1, window_bounds = array<i64: 3, 512>}]} {
    %0 = tpu.iota {dimensions = array<i32: 0>} : vector<8x85xi32>
    %1 = tpu.iota {dimensions = array<i32: 1>} : vector<8x85xi32>
    %c0_i32 = arith.constant 0 : i32
    %2 = vector.broadcast %c0_i32 : i32 to vector<8x85xi32>
    %3 = arith.cmpi eq, %0, %2 : vector<8x85xi32>
    %c4_i32 = arith.constant 4 : i32
    %4 = vector.broadcast %c4_i32 : i32 to vector<8x85xi32>
    %5 = arith.cmpi eq, %1, %4 : vector<8x85xi32>
    %6 = arith.andi %3, %5 : vector<8x85xi1>
    %c1_i32 = arith.constant 1 : i32
    %7 = vector.broadcast %c1_i32 : i32 to vector<8x85xi32>
    %8 = arith.cmpi eq, %0, %7 : vector<8x85xi32>
    %c5_i32 = arith.constant 5 : i32
    %9 = vector.broadcast %c5_i32 : i32 to vector<8x85xi32>
    %10 = arith.cmpi eq, %1, %9 : vector<8x85xi32>
    %11 = arith.andi %8, %10 : vector<8x85xi1>
    %12 = arith.ori %6, %11 : vector<8x85xi1>
    %c2_i32 = arith.constant 2 : i32
    %13 = vector.broadcast %c2_i32 : i32 to vector<8x85xi32>
    %14 = arith.cmpi eq, %0, %13 : vector<8x85xi32>
    %c6_i32 = arith.constant 6 : i32
    %15 = vector.broadcast %c6_i32 : i32 to vector<8x85xi32>
    %16 = arith.cmpi eq, %1, %15 : vector<8x85xi32>
    %17 = arith.andi %14, %16 : vector<8x85xi1>
    %18 = arith.ori %12, %17 : vector<8x85xi1>
    %c0 = arith.constant 0 : index
    %c0_0 = arith.constant 0 : index
    %19 = vector.load %arg1[%c0, %c0_0] : memref<512x85xf32, #tpu.memory_space<vmem>>, vector<512x85xf32>
    %20 = arith.extui %18 : vector<8x85xi1> to vector<8x85xi32>
    %21 = arith.sitofp %20 : vector<8x85xi32> to vector<8x85xf32>
    %cst = arith.constant dense<0.000000e+00> : vector<8x512xf32>
    %22 = tpu.matmul %21, %19, %cst {dimension_numbers = #tpu.dot_dimension_numbers<[1], [1], [0], [0], [0, 0, 1, 0], [], []>, precision = #tpu.contract_precision<fp32>} : vector<8x85xf32>, vector<512x85xf32>, vector<8x512xf32> -> vector<8x512xf32>
    %23 = vector.extract_strided_slice %22 {offsets = [0, 0], sizes = [3, 512], strides = [1, 1]} : vector<8x512xf32> to vector<3x512xf32>
    %c0_1 = arith.constant 0 : index
    %c0_2 = arith.constant 0 : index
    %24 = vector.load %arg2[%c0_1, %c0_2] : memref<3x512xf32, #tpu.memory_space<vmem>>, vector<3x512xf32>
    tpu.vector_store %arg2[%c0_1, %c0_2], %23 {strides = array<i32>} : memref<3x512xf32, #tpu.memory_space<vmem>>, vector<3x512xf32>,
    return
  }
  func.func @transform_0(%arg0: i32) -> (i32, i32) {
    %c0_i32 = arith.constant 0 : i32
    %c0_i32_0 = arith.constant 0 : i32
    return %arg0, %c0_i32 : i32, i32
  }
  func.func @transform_1(%arg0: i32) -> (i32, i32) {
    %c0_i32 = arith.constant 0 : i32
    %c0_i32_0 = arith.constant 0 : i32
    return %c0_i32, %arg0 : i32, i32
  }
}

</mosaic_0001>

<bundles_post_ra>
// kernel: tpu_custom_call.1
= control target key start
LH: loop header
LB: loop body
LE: loop exit
PB: predicated region body
PF: predicated region fallthrough
CT: control target
= control target key end

     0   :  { %vm90_vm0 = vcmask 695296   ;;  %s3751_s0 = inlined_call_operand.vmem [shape: f32[512,85], index: 0, kind: input, shape index: {}]   ;;  %s3752_s1 = inlined_call_operand.hbm [shape: f32[3,512], index: 1, kind: output, shape index: {}]  }
   0x1   :  { %v55_v0 = vld [vmem:[%s3751_s0 + $0xf8] sm:$0xff]  ;;  %v54_v2 = vld [vmem:[%s3751_s0 + $0xf0] sm:$0xff]  ;;  %v53_v7 = vld [vmem:[%s3751_s0 + $0xe8] sm:$0xff] }
   0x2   :  { %v39_v1 = vld [vmem:[%s3751_s0 + $0x78] sm:$0xff]  ;;  %v188_v3 = vsel %vm90_vm0, %v55_v0, 0  ;;  %v185_v5 = vsel %vm90_vm0, %v54_v2, 0  ;;  %v38_v6 = vld [vmem:[%s3751_s0 + $0x70] sm:$0xff]  ;;  %v37_v8 = vld [vmem:[%s3751_s0 + $0x68] sm:$0xff]  ;;  %v182_v16 = vsel %vm90_vm0, %v53_v7, 0 }
   0x3   :  { %v140_v4 = vsel %vm90_vm0, %v39_v1, 0  ;;  %v2492_v9 = vand.u32 4294901760, %v188_v3  ;;  %v2496_v11 = vand.u32 4294901760, %v185_v5  ;;  %v137_v12 = vsel %vm90_vm0, %v38_v6, 0  ;;  %v52_v13 = vld [vmem:[%s3751_s0 + $0xe0] sm:$0xff]  ;;  %v51_v19 = vld [vmem:[%s3751_s0 + $0xd8] sm:$0xff] }
   0x4   :  { %v2494_v10 = vand.u32 4294901760, %v140_v4  ;;  %v36_v14 = vld [vmem:[%s3751_s0 + $0x60] sm:$0xff]  ;;  %v2505_v15 = vand.u32 4294901760, %v137_v12  ;;  %v134_v17 = vsel %vm90_vm0, %v37_v8, 0  ;;  %v179_v18 = vsel %vm90_vm0, %v52_v13, 0  ;;  %v35_v27 = vld [vmem:[%s3751_s0 + $0x58] sm:$0xff] }
   0x5   :  { %2027 = vmatprep.subr.mxu0 %v2492_v9  ;;  %v2514_v20 = vand.u32 4294901760, %v182_v16  ;;  %v2517_v21 = vsub.f32 %v188_v3, %v2492_v9  ;;  %v2519_v22 = vand.u32 4294901760, %v134_v17  ;;  %v2526_v24 = vsub.f32 %v185_v5, %v2496_v11  ;;  %v50_v36 = vld [vmem:[%s3751_s0 + $0xd0] sm:$0xff]  ;;  %v49_v50 = vld [vmem:[%s3751_s0 + $0xc8] sm:$0xff]  ;;  %v48_v60 = vld [vmem:[%s3751_s0 + $0xc0] sm:$0xff] }
   0x6   :  { %v2522_v23 = vsub.f32 %v140_v4, %v2494_v10  ;;  %2028 = vmatpush3.xpose.msra.mxu0 %v2494_v10  ;;  %v131_v25 = vsel %vm90_vm0, %v36_v14, 0  ;;  %v2530_v26 = vsub.f32 %v137_v12, %v2505_v15  ;;  %v2538_v30 = vand.u32 4294901760, %v179_v18  ;;  %v34_v45 = vld [vmem:[%s3751_s0 + $0x50] sm:$0xff]  ;;  %v33_v59 = vld [vmem:[%s3751_s0 + $0x48] sm:$0xff] }
   0x7   :  { %2029 = vmatprep.subr.mxu0 %v2496_v11  ;;  %v3769_v28 = vand.u32 4294901760, %v2517_v21  ;;  %v176_v31 = vsel %vm90_vm0, %v51_v19, 0  ;;  %v3767_v32 = vand.u32 4294901760, %v2526_v24  ;;  %v2542_v33 = vand.u32 4294901760, %v131_v25 }
   0x8   :  { %v3768_v29 = vand.u32 4294901760, %v2522_v23  ;;  %v3765_v34 = vand.u32 4294901760, %v2530_v26  ;;  %v2546_v35 = vsub.f32 %v182_v16, %v2514_v20  ;;  %v128_v39 = vsel %vm90_vm0, %v35_v27, 0 }
   0x9   :  { %v510_v37 = vsub.f32 %v2517_v21, %v3769_v28  ;;  %v2559_v40 = vsub.f32 %v134_v17, %v2519_v22  ;;  %v517_v41 = vsub.f32 %v2526_v24, %v3767_v32  ;;  %v2568_v43 = vand.u32 4294901760, %v176_v31 }
   0xa   :  { %v398_v38 = vsub.f32 %v2522_v23, %v3768_v29  ;;  %2030 = vmatpush3.xpose.msra.mxu0 %v2505_v15  ;;  %v405_v42 = vsub.f32 %v2530_v26, %v3765_v34  ;;  %v3763_v44 = vand.u32 4294901760, %v2546_v35  ;;  %v173_v49 = vsel %vm90_vm0, %v50_v36, 0 }
   0xb   :  { %2031 = vmatprep.subr.mxu0 %v2514_v20  ;;  %v511_v46 = vand.u32 4294901760, %v510_v37  ;;  %v3762_v48 = vand.u32 4294901760, %v2559_v40  ;;  %v518_v51 = vand.u32 4294901760, %v517_v41  ;;  %v2583_v54 = vand.u32 4294901760, %v128_v39 }
   0xc   :  { %v399_v47 = vand.u32 4294901760, %v398_v38  ;;  %v406_v52 = vand.u32 4294901760, %v405_v42  ;;  %v524_v53 = vsub.f32 %v2546_v35, %v3763_v44  ;;  %v2589_v56 = vsub.f32 %v179_v18, %v2538_v30 }
   0xd   :  { %2061 = vmatprep.subr.mxu1 %v511_v46  ;;  %v412_v55 = vsub.f32 %v2559_v40, %v3762_v48  ;;  %v125_v57 = vsel %vm90_vm0, %v34_v45, 0  ;;  %v2593_v58 = vsub.f32 %v131_v25, %v2542_v33 }
   0xe   :  { %6 = vsyncpa [#allocation3], 0  ;;  %2032 = vmatpush3.xpose.msra.mxu0 %v2519_v22  ;;  %2062 = vmatpush3.xpose.msra.mxu1 %v399_v47  ;;  %v525_v61 = vand.u32 4294901760, %v524_v53  ;;  %v2602_v62 = vand.u32 4294901760, %v173_v49  ;;  %v170_v63 = vsel %vm90_vm0, %v49_v50, 0  ;;  %v2606_v0 = vsub.f32 %v176_v31, %v2568_v43  ;;  %v32_v5 = vld [vmem:[%s3751_s0 + $0x40] sm:$0xff] }
   0xf   :  { %2033 = vmatprep.subr.mxu0 %v2538_v30  ;;  %2063 = vmatprep.subr.mxu1 %v518_v51  ;;  %v413_v1 = vand.u32 4294901760, %v412_v55  ;;  %v3761_v2 = vand.u32 4294901760, %v2589_v56  ;;  %v2610_v3 = vand.u32 4294901760, %v125_v57  ;;  %v3758_v4 = vand.u32 4294901760, %v2593_v58  ;;  %v47_v18 = vld [vmem:[%s3751_s0 + $0xb8] sm:$0xff]  ;;  %v46_v46 = vld [vmem:[%s3751_s0 + $0xb0] sm:$0xff] }
  0x10   :  { %v3757_v6 = vand.u32 4294901760, %v2606_v0  ;;  %v122_v7 = vsel %vm90_vm0, %v33_v59, 0  ;;  %v2619_v8 = vsub.f32 %v128_v39, %v2583_v54  ;;  %v167_v12 = vsel %vm90_vm0, %v48_v60, 0  ;;  %v31_v39 = vld [vmem:[%s3751_s0 + $0x38] sm:$0xff] }
  0x11   :  { %v531_v13 = vsub.f32 %v2589_v56, %v3761_v2  ;;  %v419_v14 = vsub.f32 %v2593_v58, %v3758_v4  ;;  %v2628_v16 = vand.u32 4294901760, %v170_v63  ;;  %v2630_v17 = vand.u32 4294901760, %v122_v7 }
  0x12   :  { %2034 = vmatpush3.xpose.msra.mxu0 %v2542_v33  ;;  %2064 = vmatpush3.xpose.msra.mxu1 %v406_v52  ;;  %v538_v19 = vsub.f32 %v2606_v0, %v3757_v6  ;;  %v3755_v25 = vand.u32 4294901760, %v2619_v8  ;;  %v2641_v27 = vsub.f32 %v173_v49, %v2602_v62  ;;  %v119_v31 = vsel %vm90_vm0, %v32_v5, 0  ;;  %v30_v52 = vld [vmem:[%s3751_s0 + $0x30] sm:$0xff]  ;;  %v45_v5 = vld [vmem:[%s3751_s0 + $0xa8] sm:$0xff] }
  0x13   :  { %2035 = vmatprep.subr.mxu0 %v2568_v43  ;;  %2065 = vmatprep.subr.mxu1 %v525_v61  ;;  %v532_v36 = vand.u32 4294901760, %v531_v13  ;;  %v2645_v37 = vand.u32 4294901760, %v167_v12  ;;  %v2648_v38 = vsub.f32 %v125_v57, %v2610_v3  ;;  %v164_v45 = vsel %vm90_vm0, %v47_v18, 0 }
  0x14   :  { %v426_v41 = vsub.f32 %v2619_v8, %v3755_v25  ;;  %v3754_v42 = vand.u32 4294901760, %v2641_v27  ;;  %v420_v47 = vand.u32 4294901760, %v419_v14  ;;  %v2661_v49 = vand.u32 4294901760, %v119_v31 }
  0x15   :  { %3878 = vst [vmem:[#allocation5_spill] sm:$0xff] %v2645_v37  ;;  %v3753_v50 = vand.u32 4294901760, %v2648_v38  ;;  %v2665_v51 = vsub.f32 %v170_v63, %v2628_v16  ;;  %v539_v53 = vand.u32 4294901760, %v538_v19  ;;  %v2671_v55 = vand.u32 4294901760, %v164_v45 }
  0x16   :  { %3879 = vst [vmem:[#allocation6_spill] sm:$0xff] %v2661_v49  ;;  %2036 = vmatpush3.xpose.msra.mxu0 %v2583_v54  ;;  %2066 = vmatpush3.xpose.msra.mxu1 %v413_v1  ;;  %v116_v57 = vsel %vm90_vm0, %v31_v39, 0  ;;  %v2675_v59 = vsub.f32 %v122_v7, %v2630_v17  ;;  %v545_v60 = vsub.f32 %v2641_v27, %v3754_v42  ;;  %v161_v63 = vsel %vm90_vm0, %v46_v46, 0 }
  0x17   :  { %3880 = vst [vmem:[#allocation7_spill] sm:$0xff] %v2671_v55  ;;  %2037 = vmatprep.subr.mxu0 %v2602_v62  ;;  %2067 = vmatprep.subr.mxu1 %v532_v36  ;;  %v3756_v61 = vand.u32 4294901760, %v2665_v51  ;;  %v2684_v1 = vsub.f32 %v167_v12, %v2645_v37  ;;  %v427_v7 = vand.u32 4294901760, %v426_v41  ;;  %v113_v13 = vsel %vm90_vm0, %v30_v52, 0  ;;  %v29_v12 = vld [vmem:[%s3751_s0 + $0x28] sm:$0xff] }
  0x18   :  { %v433_v14 = vsub.f32 %v2648_v38, %v3753_v50  ;;  %v2693_v18 = vand.u32 4294901760, %v116_v57  ;;  %v3759_v19 = vand.u32 4294901760, %v2675_v59  ;;  %v2701_v39 = vand.u32 4294901760, %v161_v63 }
  0x19   :  { %v3760_v36 = vand.u32 4294901760, %v2684_v1  ;;  %v2704_v41 = vsub.f32 %v119_v31, %v2661_v49  ;;  %v158_v46 = vsel %vm90_vm0, %v45_v5, 0  ;;  %v2708_v52 = vsub.f32 %v164_v45, %v2671_v55  ;;  %v44_v31 = vld [vmem:[%s3751_s0 + $0xa0] sm:$0xff] }
  0x1a   :  { %3881 = vst [vmem:[#allocation8_spill] sm:$0xff] %v2693_v18  ;;  %2038 = vmatpush3.xpose.msra.mxu0 %v2610_v3  ;;  %2068 = vmatpush3.xpose.msra.mxu1 %v420_v47  ;;  %3882 = vst [vmem:[#allocation9_spill] sm:$0xff] %v2701_v39  ;;  %v546_v50 = vand.u32 4294901760, %v545_v60  ;;  %v552_v42 = vsub.f32 %v2665_v51, %v3756_v61  ;;  %v2714_v25 = vand.u32 4294901760, %v113_v13  ;;  %v2719_v47 = vand.u32 4294901760, %v158_v46 }
  0x1b   :  { %2039 = vmatprep.subr.mxu0 %v2628_v16  ;;  %2069 = vmatprep.subr.mxu1 %v539_v53  ;;  %v110_v5 = vsel %vm90_vm0, %v29_v12, 0  ;;  %v434_v45 = vand.u32 4294901760, %v433_v14  ;;  %v440_v53 = vsub.f32 %v2675_v59, %v3759_v19  ;;  %v559_v60 = vsub.f32 %v2684_v1, %v3760_v36  ;;  %v28_v19 = vld [vmem:[%s3751_s0 + $0x20] sm:$0xff] }
  0x1c   :  { %3883 = vst [vmem:[#allocation10_spill] sm:$0xff] %v2714_v25  ;;  %3884 = vst [vmem:[#allocation11_spill] sm:$0xff] %v2719_v47  ;;  %v3764_v61 = vand.u32 4294901760, %v2704_v41  ;;  %v3766_v6 = vand.u32 4294901760, %v2708_v52  ;;  %v2732_v4 = vsub.f32 %v116_v57, %v2693_v18  ;;  %v155_v14 = vsel %vm90_vm0, %v44_v31, 0  ;;  %v43_v57 = vld [vmem:[%s3751_s0 + $0x98] sm:$0xff] }
  0x1d   :  { %v2736_v12 = vsub.f32 %v161_v63, %v2701_v39  ;;  %v553_v36 = vand.u32 4294901760, %v552_v42  ;;  %v2742_v2 = vand.u32 4294901760, %v110_v5  ;;  %v2751_v63 = vsub.f32 %v158_v46, %v2719_v47 }
  0x1e   :  { %2040 = vmatpush3.xpose.msra.mxu0 %v2630_v17  ;;  %2070 = vmatpush3.xpose.msra.mxu1 %v427_v7  ;;  %v2745_v7 = vsub.f32 %v113_v13, %v2714_v25  ;;  %v441_v31 = vand.u32 4294901760, %v440_v53  ;;  %v447_v48 = vsub.f32 %v2704_v41, %v3764_v61  ;;  %v2756_v44 = vand.u32 4294901760, %v155_v14 }
  0x1f   :  { %2041 = vmatprep.subr.mxu0 %v2645_v37  ;;  %2071 = vmatprep.subr.mxu1 %v546_v50  ;;  %3886 = vst [vmem:[#allocation13_spill] sm:$0xff] %v2751_v63  ;;  %v107_v42 = vsel %vm90_vm0, %v28_v19, 0  ;;  %v560_v50 = vand.u32 4294901760, %v559_v60  ;;  %v566_v13 = vsub.f32 %v2708_v52, %v3766_v6  ;;  %v3770_v46 = vand.u32 4294901760, %v2732_v4 }
  0x20   :  { %3885 = vst [vmem:[#allocation12_spill] sm:$0xff] %v2745_v7  ;;  %3887 = vst [vmem:[#allocation14_spill] sm:$0xff] %v2756_v44  ;;  %v3771_v53 = vand.u32 4294901760, %v2736_v12  ;;  %v3778_v61 = vand.u32 4294901760, %v2745_v7  ;;  %v152_v34 = vsel %vm90_vm0, %v43_v57, 0  ;;  %v3781_v19 = vand.u32 4294901760, %v2751_v63 }
  0x21   :  { %v2773_v60 = vsub.f32 %v110_v5, %v2742_v2  ;;  %v2775_v6 = vand.u32 4294901760, %v107_v42  ;;  %v448_v32 = vand.u32 4294901760, %v447_v48  ;;  %v2781_v29 = vsub.f32 %v155_v14, %v2756_v44  ;;  %v26_v14 = vld [vmem:[%s3751_s0 + $0x10] sm:$0xff] }
  0x22   :  { %2042 = vmatpush3.xpose.msra.mxu0 %v2661_v49  ;;  %2072 = vmatpush3.xpose.msra.mxu1 %v434_v45  ;;  %v27_v45 = vld [vmem:[%s3751_s0 + $0x18] sm:$0xff]  ;;  %v454_v57 = vsub.f32 %v2732_v4, %v3770_v46  ;;  %v573_v5 = vsub.f32 %v2736_v12, %v3771_v53  ;;  %v2790_v28 = vand.u32 4294901760, %v152_v34  ;;  %v461_v46 = vsub.f32 %v2745_v7, %v3778_v61 }
  0x23   :  { %2043 = vmatprep.subr.mxu0 %v2671_v55  ;;  %2073 = vmatprep.subr.mxu1 %v553_v36  ;;  %3888 = vst [vmem:[#allocation15_spill] sm:$0xff] %v2773_v60  ;;  %3889 = vst [vmem:[#allocation16_spill] sm:$0xff] %v2775_v6  ;;  %v42_v36 = vld [vmem:[%s3751_s0 + $0x90] sm:$0xff]  ;;  %v104_v48 = vsel %vm90_vm0, %v27_v45, 0  ;;  %v580_v53 = vsub.f32 %v2751_v63, %v3781_v19  ;;  %v41_v45 = vld [vmem:[%s3751_s0 + $0x88] sm:$0xff]  ;;  %v101_v49 = vsel %vm90_vm0, %v26_v14, 0 }
  0x24   :  { %3890 = vst [vmem:[#allocation17_spill] sm:$0xff] %v2790_v28  ;;  %v149_v55 = vsel %vm90_vm0, %v42_v36, 0  ;;  %v455_v19 = vand.u32 4294901760, %v454_v57  ;;  %v146_v63 = vsel %vm90_vm0, %v41_v45, 0  ;;  %v2818_v7 = vsub.f32 %v152_v34, %v2790_v28  ;;  %v40_v34 = vld [vmem:[%s3751_s0 + $0x80] sm:$0xff] }
  0x25   :  { %v462_v36 = vand.u32 4294901760, %v461_v46  ;;  %v581_v61 = vand.u32 4294901760, %v580_v53  ;;  %v3892_v14 = vand.u32 4294901760, %v2773_v60  ;;  %v2827_v57 = vand.u32 4294901760, %v149_v55 }
  0x26   :  { %2044 = vmatpush3.xpose.msra.mxu0 %v2693_v18  ;;  %2074 = vmatpush3.xpose.msra.mxu1 %v441_v31  ;;  %v567_v31 = vand.u32 4294901760, %v566_v13  ;;  %v2811_v13 = vand.u32 4294901760, %v104_v48  ;;  %v574_v18 = vand.u32 4294901760, %v573_v5  ;;  %v2832_v5 = vand.u32 4294901760, %v101_v49 }
  0x27   :  { %2045 = vmatprep.subr.mxu0 %v2701_v39  ;;  %2075 = vmatprep.subr.mxu1 %v560_v50  ;;  %v2809_v39 = vsub.f32 %v107_v42, %v2775_v6  ;;  %v9_v50 = vlaneseq  ;;  %v25_v42 = vld [vmem:[%s3751_s0 + $0x8] sm:$0xff]  ;;  %3893 = vst [vmem:[#allocation19_spill] sm:$0xff] %v2827_v57  ;;  %v2838_v53 = vand.u32 4294901760, %v146_v63  ;;  %v143_v45 = vsel %vm90_vm0, %v40_v34, 0 }
  0x28   :  { %3891 = vst [vmem:[#allocation18_spill] sm:$0xff] %v2811_v13  ;;  %3894 = vst [vmem:[#allocation20_spill] sm:$0xff] %v2832_v5 }
  0x29   :  { %v12_v37 = vand.u32 127, %v9_v50  ;;  %3896 = vst [vmem:[#allocation21_spill] sm:$0xff] %v2838_v53 }
  0x2a   :  { %2046 = vmatpush3.xpose.msra.mxu0 %v2714_v25  ;;  %2076 = vmatpush3.xpose.msra.mxu1 %v448_v32  ;;  %v468_v32 = vsub.f32 %v2773_v60, %v3892_v14  ;;  %v10_v25 = vshrl.u32 %v9_v50, 7  ;;  %v98_v14 = vsel %vm90_vm0, %v25_v42, 0  ;;  %v2849_v50 = vsub.f32 %v149_v55, %v2827_v57 }
  0x2b   :  { %2047 = vmatprep.subr.mxu0 %v2719_v47  ;;  %2077 = vmatprep.subr.mxu1 %v567_v31  ;;  %v3895_v31 = vand.u32 4294901760, %v2781_v29  ;;  %v2842_v47 = vsub.f32 %v104_v48, %v2811_v13  ;;  %vm14_vm2 = vcmp.eq.s32.totalorder %v12_v37, 4  ;;  %vm17_vm5 = vcmp.eq.s32.totalorder %v12_v37, 5 }
  0x2c   :  { %vm13_vm1 = vcmp.eq.s32.totalorder %v10_v25, 0  ;;  %3898 = vst [vmem:[#allocation23_spill] sm:$0xff] %v2849_v50  ;;  %vm16_vm4 = vcmp.eq.s32.totalorder %v10_v25, 1  ;;  %vm20_vm6 = vcmp.eq.s32.totalorder %v10_v25, 2  ;;  %vm21_vm8 = vcmp.eq.s32.totalorder %v12_v37, 6 }
  0x2d   :  { %v587_v46 = vsub.f32 %v2781_v29, %v3895_v31  ;;  %3897 = vst [vmem:[#allocation22_spill] sm:$0xff] %v2842_v47  ;;  %vm2851_vm3 = vmand %vm13_vm1, %vm14_vm2  ;;  %v3903_v55 = vand.u32 4294901760, %v2809_v39  ;;  %v2871_v60 = vand.u32 4294901760, %v98_v14  ;;  %v2876_v37 = vsub.f32 %v101_v49, %v2832_v5 }
  0x2e   :  { %2048 = vmatpush3.xpose.msra.mxu0 %v2742_v2  ;;  %2078 = vmatpush3.xpose.msra.mxu1 %v455_v19  ;;  %v24_v19 = vld [vmem:[%s3751_s0] sm:$0xff]  ;;  %vm2858_vm7 = vmand %vm16_vm4, %vm17_vm5  ;;  %v3802_v48 = vand.u32 4294901760, %v2849_v50 }
  0x2f   :  { %2049 = vmatprep.subr.mxu0 %v2756_v44  ;;  %2079 = vmatprep.subr.mxu1 %v574_v18  ;;  %v469_v18 = vand.u32 4294901760, %v468_v32  ;;  %v475_v34 = vsub.f32 %v2809_v39, %v3903_v55  ;;  %vm19_vm9 = vmor %vm2851_vm3, %vm2858_vm7  ;;  %v588_v25 = vand.u32 4294901760, %v587_v46  ;;  %v2873_v44 = vand.u32 4294901760, %v143_v45 }
  0x30   :  { %vm22_vm10 = vmand %vm20_vm6, %vm21_vm8  ;;  %v3904_v32 = vand.u32 4294901760, %v2818_v7  ;;  %v2885_v46 = vsub.f32 %v146_v63, %v2838_v53  ;;  %v2459_v55 = vmov 0.0  }
  0x31   :  { %vm23_vm11 = vmor %vm19_vm9, %vm22_vm10  ;;  %v476_v49 = vand.u32 4294901760, %v475_v34  ;;  %v2903_v34 = vsub.f32 %v98_v14, %v2871_v60  ;;  %v3907_v14 = vand.u32 4294901760, %v2876_v37 }
  0x32   :  { %2050 = vmatpush3.xpose.msra.mxu0 %v2775_v6  ;;  %2080 = vmatpush3.xpose.msra.mxu1 %v462_v36  ;;  %v594_v42 = vsub.f32 %v2818_v7, %v3904_v32  ;;  %v95_v36 = vsel %vm90_vm0, %v24_v19, 0  ;;  %v2887_v31 = vsel %vm23_vm11, 1.0, %v2459_v55  ;;  %v3905_v6 = vand.u32 4294901760, %v2842_v47 }
  0x33   :  { %2051 = vmatprep.subr.mxu0 %v2790_v28  ;;  %2081 = vmatprep.subr.mxu1 %v581_v61  ;;  %v92_v28 = vsel %vm90_vm0, %v2887_v31, 0  ;;  %v2897_v19 = vand.u32 4294901760, %v95_v36  ;;  %3906 = vst [vmem:[#allocation24_spill] sm:$0xff] %v2903_v34  ;;  %v601_v55 = vsub.f32 %v2849_v50, %v3802_v48  ;;  %v3811_v48 = vand.u32 4294901760, %v2903_v34 }
  0x34   :  { %v482_v61 = vsub.f32 %v2842_v47, %v3905_v6  ;;  %2093 = vmatprep.mubr.msk.f32.mxu1 %vm90_vm0, %v2887_v31  ;;  %v2900_v32 = vsub.f32 %v92_v28, %v92_v28  ;;  %v595_v6 = vand.u32 4294901760, %v594_v42 }
  0x36   :  { %2052 = vmatpush3.xpose.msra.mxu0 %v2811_v13  ;;  %2082 = vmatpush3.xpose.msra.mxu1 %v469_v18  ;;  %v2911_v18 = vsub.f32 %v143_v45, %v2873_v44  ;;  %v2914_v63 = vand.u32 4294901760, %v2900_v32  ;;  %v483_v28 = vand.u32 4294901760, %v482_v61  ;;  %v2924_v13 = vsub.f32 %v95_v36, %v2897_v19 }
  0x37   :  { %2053 = vmatprep.subr.mxu0 %v2827_v57  ;;  %2083 = vmatprep.subr.mxu1 %v588_v25  ;;  %v489_v25 = vsub.f32 %v2876_v37, %v3907_v14  ;;  %v602_v45 = vand.u32 4294901760, %v601_v55  ;;  %v3908_v61 = vand.u32 4294901760, %v2885_v46  ;;  %v496_v36 = vsub.f32 %v2903_v34, %v3811_v48  ;;  %v3922_v48 = vld [vmem:[#allocation17_spill] sm:$0xff] }
  0x38   :  { %v386_v42 = vsub.f32 %v2900_v32, %v2914_v63 }
  0x39   :  { %v490_v14 = vand.u32 4294901760, %v489_v25 }
  0x3a   :  { %2054 = vmatpush3.xpose.msra.mxu0 %v2832_v5  ;;  %2084 = vmatpush3.xpose.msra.mxu1 %v476_v49  ;;  %v608_v49 = vsub.f32 %v2885_v46, %v3908_v61  ;;  %v3810_v5 = vand.u32 4294901760, %v2911_v18  ;;  %v2931_v57 = vand.u32 4294901760, %v386_v42  ;;  %v3910_v61 = vld [vmem:[#allocation5_spill] sm:$0xff] }
  0x3b   :  { %2055 = vmatprep.subr.mxu0 %v2838_v53  ;;  %2085 = vmatprep.subr.mxu1 %v595_v6  ;;  %v3809_v53 = vand.u32 4294901760, %v2924_v13 }
  0x3c   :  { %3909 = vst [vmem:[#allocation25_spill] sm:$0xff] %v2931_v57  ;;  %v609_v6 = vand.u32 4294901760, %v608_v49  ;;  %v615_v55 = vsub.f32 %v2911_v18, %v3810_v5  ;;  %2059 = vmatprep.mubr.f32.mxu0 %v2931_v57  ;;  %v3911_v49 = vld [vmem:[#allocation12_spill] sm:$0xff] }
  0x3d   :  { %v503_v25 = vsub.f32 %v2924_v13, %v3809_v53  ;;  %v3920_v53 = vld [vmem:[#allocation14_spill] sm:$0xff]  ;;  %v3921_v5 = vld [vmem:[#allocation16_spill] sm:$0xff] }
  0x3e   :  { %2056 = vmatpush3.xpose.msra.mxu0 %v2871_v60  ;;  %2086 = vmatpush3.xpose.msra.mxu1 %v483_v28  ;;  %v497_v28 = vand.u32 4294901760, %v496_v36  ;;  %v616_v42 = vand.u32 4294901760, %v615_v55  ;;  %v3913_v36 = vld [vmem:[#allocation13_spill] sm:$0xff]  ;;  %v3915_v55 = vld [vmem:[#allocation15_spill] sm:$0xff] }
  0x3f   :  { %2057 = vmatprep.subr.mxu0 %v2873_v44  ;;  %2087 = vmatprep.subr.mxu1 %v602_v45  ;;  %v504_v45 = vand.u32 4294901760, %v503_v25  ;;  %v3917_v25 = vld [vmem:[#allocation9_spill] sm:$0xff] }
  0x42   :  { %2058 = vmatpush3.xpose.msra.mxu0 %v2897_v19  ;;  %2088 = vmatpush3.xpose.msra.mxu1 %v490_v14  ;;  %v3912_v14 = vld [vmem:[#allocation6_spill] sm:$0xff] }
  0x43   :  { %2089 = vmatprep.subr.mxu1 %v609_v6  ;;  %2095 = vmatprep.subr.mxu0 %v2517_v21  ;;  %v3914_v6 = vld [vmem:[#allocation7_spill] sm:$0xff] }
  0x45   :  { %2060 = vmatmul.mubr.f32.vlgmr.msra.gmra.mxu0 %v2931_v57  ;;  %v3923_v57 = vld [vmem:[#allocation18_spill] sm:$0xff] }
  0x46   :  { %2090 = vmatpush3.xpose.msra.mxu1 %v497_v28  ;;  %2096 = vmatpush3.xpose.msra.mxu0 %v2522_v23  ;;  %v3916_v28 = vld [vmem:[#allocation8_spill] sm:$0xff] }
  0x47   :  { %2091 = vmatprep.subr.mxu1 %v616_v42  ;;  %2097 = vmatprep.subr.mxu0 %v2526_v24  ;;  %v3918_v42 = vld [vmem:[#allocation10_spill] sm:$0xff] }
  0x48   :  { %2127 = vmatprep.mubr.f32.mxu0 %v2900_v32 }
  0x4a   :  { %2092 = vmatpush3.xpose.msra.mxu1 %v504_v45  ;;  %2098 = vmatpush3.xpose.msra.mxu0 %v2530_v26  ;;  %v3919_v45 = vld [vmem:[#allocation11_spill] sm:$0xff] }
  0x4b   :  { %2099 = vmatprep.subr.mxu0 %v2546_v35  ;;  %2129 = vmatprep.subr.mxu1 %v2492_v9 }
  0x4d   :  { %2094 = vmatmul.mubr.msk.f32.vlgmr.msra.gmra.mxu1 %vm90_vm0, %v2887_v31 }
  0x4e   :  { %2100 = vmatpush3.xpose.msra.mxu0 %v2559_v40  ;;  %2130 = vmatpush3.xpose.msra.mxu1 %v2494_v10 }
  0x4f   :  { %2101 = vmatprep.subr.mxu0 %v2589_v56  ;;  %2131 = vmatprep.subr.mxu1 %v2496_v11 }
  0x50   :  { %2161 = vmatprep.mubr.f32.mxu1 %v2914_v63 }
  0x52   :  { %2102 = vmatpush3.xpose.msra.mxu0 %v2593_v58  ;;  %2132 = vmatpush3.xpose.msra.mxu1 %v2505_v15 }
  0x53   :  { %2103 = vmatprep.subr.mxu0 %v2606_v0  ;;  %2133 = vmatprep.subr.mxu1 %v2514_v20 }
  0x56   :  { %2104 = vmatpush3.xpose.msra.mxu0 %v2619_v8  ;;  %2134 = vmatpush3.xpose.msra.mxu1 %v2519_v22 }
  0x57   :  { %2105 = vmatprep.subr.mxu0 %v2641_v27  ;;  %2135 = vmatprep.subr.mxu1 %v2538_v30 }
  0x5a   :  { %2106 = vmatpush3.xpose.msra.mxu0 %v2648_v38  ;;  %2136 = vmatpush3.xpose.msra.mxu1 %v2542_v33 }
  0x5b   :  { %2107 = vmatprep.subr.mxu0 %v2665_v51  ;;  %2137 = vmatprep.subr.mxu1 %v2568_v43 }
  0x5e   :  { %2108 = vmatpush3.xpose.msra.mxu0 %v2675_v59  ;;  %2138 = vmatpush3.xpose.msra.mxu1 %v2583_v54 }
  0x5f   :  { %2109 = vmatprep.subr.mxu0 %v2684_v1  ;;  %2139 = vmatprep.subr.mxu1 %v2602_v62 }
  0x62   :  { %2110 = vmatpush3.xpose.msra.mxu0 %v2704_v41  ;;  %2140 = vmatpush3.xpose.msra.mxu1 %v2610_v3 }
  0x63   :  { %2111 = vmatprep.subr.mxu0 %v2708_v52  ;;  %2141 = vmatprep.subr.mxu1 %v2628_v16 }
  0x66   :  { %2112 = vmatpush3.xpose.msra.mxu0 %v2732_v4  ;;  %2142 = vmatpush3.xpose.msra.mxu1 %v2630_v17 }
  0x67   :  { %2113 = vmatprep.subr.mxu0 %v2736_v12  ;;  %2143 = vmatprep.subr.mxu1 %v3910_v61 }
  0x6a   :  { %2114 = vmatpush3.xpose.msra.mxu0 %v3911_v49  ;;  %2144 = vmatpush3.xpose.msra.mxu1 %v3912_v14 }
  0x6b   :  { %2115 = vmatprep.subr.mxu0 %v3913_v36  ;;  %2145 = vmatprep.subr.mxu1 %v3914_v6 }
  0x6e   :  { %2116 = vmatpush3.xpose.msra.mxu0 %v3915_v55  ;;  %2146 = vmatpush3.xpose.msra.mxu1 %v3916_v28 }
  0x6f   :  { %2117 = vmatprep.subr.mxu0 %v2781_v29  ;;  %2147 = vmatprep.subr.mxu1 %v3917_v25 }
  0x72   :  { %2118 = vmatpush3.xpose.msra.mxu0 %v2809_v39  ;;  %2148 = vmatpush3.xpose.msra.mxu1 %v3918_v42 }
  0x73   :  { %2119 = vmatprep.subr.mxu0 %v2818_v7  ;;  %2149 = vmatprep.subr.mxu1 %v3919_v45 }
  0x76   :  { %2120 = vmatpush3.xpose.msra.mxu0 %v2842_v47  ;;  %2150 = vmatpush3.xpose.msra.mxu1 %v2742_v2  ;;  %v3924_v47 = vld [vmem:[#allocation19_spill] sm:$0xff] }
  0x77   :  { %2121 = vmatprep.subr.mxu0 %v2849_v50  ;;  %2151 = vmatprep.subr.mxu1 %v3920_v53  ;;  %v3925_v50 = vld [vmem:[#allocation20_spill] sm:$0xff]  ;;  %v3926_v53 = vld [vmem:[#allocation21_spill] sm:$0xff] }
  0x7a   :  { %2122 = vmatpush3.xpose.msra.mxu0 %v2876_v37  ;;  %2152 = vmatpush3.xpose.msra.mxu1 %v3921_v5  ;;  %v3927_v5 = vand.u32 4294901760, %v2517_v21  ;;  %v3930_v21 = vand.u32 4294901760, %v2530_v26  ;;  %v3934_v26 = vand.u32 4294901760, %v2593_v58  ;;  %v3948_v58 = vand.u32 4294901760, %v3915_v55 }
  0x7b   :  { %2123 = vmatprep.subr.mxu0 %v2885_v46  ;;  %2153 = vmatprep.subr.mxu1 %v3922_v48 }
  0x7e   :  { %2124 = vmatpush3.xpose.msra.mxu0 %v2903_v34  ;;  %2154 = vmatpush3.xpose.msra.mxu1 %v3923_v57  ;;  %v3928_v34 = vand.u32 4294901760, %v2522_v23  ;;  %v3932_v23 = vand.u32 4294901760, %v2559_v40  ;;  %v3944_v40 = vand.u32 4294901760, %v2732_v4  ;;  %v3951_v4 = vand.u32 4294901760, %v2818_v7  ;;  %v3958_v7 = vld [vmem:[#allocation16_spill] sm:$0xff] }
  0x7f   :  { %2125 = vmatprep.subr.mxu0 %v2911_v18  ;;  %2155 = vmatprep.subr.mxu1 %v3924_v47  ;;  %v3929_v47 = vand.u32 4294901760, %v2526_v24  ;;  %v3933_v24 = vand.u32 4294901760, %v2589_v56  ;;  %v3947_v56 = vand.u32 4294901760, %v3913_v36 }
  0x82   :  { %2126 = vmatpush3.xpose.msra.mxu0 %v2924_v13  ;;  %2156 = vmatpush3.xpose.msra.mxu1 %v3925_v50 }
  0x83   :  { %2157 = vmatprep.subr.mxu1 %v3926_v53  ;;  %2163 = vmatprep.subr.mxu0 %v3927_v5  ;;  %v3931_v5 = vand.u32 4294901760, %v2546_v35  ;;  %v3938_v35 = vand.u32 4294901760, %v2648_v38 }
  0x85   :  { %2128 = vmatmul.mubr.f32.vlgmr.msra.gmra.mxu0 %v2900_v32 }
  0x86   :  { %2158 = vmatpush3.xpose.msra.mxu1 %v2871_v60  ;;  %2164 = vmatpush3.xpose.msra.mxu0 %v3928_v34 }
  0x87   :  { %2159 = vmatprep.subr.mxu1 %v2873_v44  ;;  %2165 = vmatprep.subr.mxu0 %v3929_v47  ;;  %v85_v47 = vld [vmem:[%s3751_s0 + $0x1e8] sm:$0xff] }
  0x88   :  { %2195 = vmatprep.mubr.msk.f32.mxu0 %vm90_vm0, %v2887_v31  ;;  %v278_v36 = vsel %vm90_vm0, %v85_v47, 0 }
  0x8a   :  { %2160 = vmatpush3.xpose.msra.mxu1 %v2897_v19  ;;  %2166 = vmatpush3.xpose.msra.mxu0 %v3930_v21 }
  0x8b   :  { %2167 = vmatprep.subr.mxu0 %v3931_v5  ;;  %2197 = vmatprep.subr.mxu1 %v2492_v9  ;;  %v3935_v9 = vand.u32 4294901760, %v2606_v0  ;;  %v87_v0 = vld [vmem:[%s3751_s0 + $0x1f8] sm:$0xff]  ;;  %v3962_v5 = vand.u32 4294901760, %v2911_v18 }
  0x8c   :  { %v83_v18 = vld [vmem:[%s3751_s0 + $0x1d8] sm:$0xff] }
  0x8d   :  { %2162 = vmatmul.mubr.f32.vlgmr.msra.gmra.mxu1 %v2914_v63 }
  0x8e   :  { %2168 = vmatpush3.xpose.msra.mxu0 %v3932_v23  ;;  %2198 = vmatpush3.xpose.msra.mxu1 %v2494_v10  ;;  %v3936_v10 = vand.u32 4294901760, %v2619_v8  ;;  %v284_v8 = vsel %vm90_vm0, %v87_v0, 0  ;;  %v3963_v23 = vld [vmem:[#allocation19_spill] sm:$0xff] }
  0x8f   :  { %2169 = vmatprep.subr.mxu0 %v3933_v24  ;;  %2199 = vmatprep.subr.mxu1 %v2496_v11  ;;  %v3937_v11 = vand.u32 4294901760, %v2641_v27  ;;  %v3106_v38 = vand.u32 4294901760, %v284_v8  ;;  %v68_v24 = vld [vmem:[%s3751_s0 + $0x160] sm:$0xff] }
  0x90   :  { %2229 = vmatprep.mubr.msk.f32.mxu1 %vm90_vm0, %v2887_v31 }
  0x92   :  { %2170 = vmatpush3.xpose.msra.mxu0 %v3934_v26  ;;  %2200 = vmatpush3.xpose.msra.mxu1 %v2505_v15  ;;  %v3939_v15 = vand.u32 4294901760, %v2665_v51 }
  0x93   :  { %2171 = vmatprep.subr.mxu0 %v3935_v9  ;;  %2201 = vmatprep.subr.mxu1 %v2514_v20  ;;  %v3940_v20 = vand.u32 4294901760, %v2675_v59  ;;  %v3954_v59 = vld [vmem:[#allocation23_spill] sm:$0xff] }
  0x96   :  { %2172 = vmatpush3.xpose.msra.mxu0 %v3936_v10  ;;  %2202 = vmatpush3.xpose.msra.mxu1 %v2519_v22  ;;  %v3941_v22 = vand.u32 4294901760, %v2684_v1  ;;  %v3955_v1 = vand.u32 4294901760, %v3954_v59 }
  0x97   :  { %2173 = vmatprep.subr.mxu0 %v3937_v11  ;;  %2203 = vmatprep.subr.mxu1 %v2538_v30  ;;  %v3942_v30 = vand.u32 4294901760, %v2704_v41  ;;  %v3964_v11 = vand.u32 4294901760, %v2924_v13  ;;  %v272_v13 = vsel %vm90_vm0, %v83_v18, 0 }
  0x98   :  { %v3212_v0 = vand.u32 4294901760, %v272_v13 }
  0x9a   :  { %2174 = vmatpush3.xpose.msra.mxu0 %v3938_v35  ;;  %2204 = vmatpush3.xpose.msra.mxu1 %v2542_v33  ;;  %v3943_v33 = vand.u32 4294901760, %v2708_v52  ;;  %v70_v52 = vld [vmem:[%s3751_s0 + $0x170] sm:$0xff] }
  0x9b   :  { %2175 = vmatprep.subr.mxu0 %v3939_v15  ;;  %2205 = vmatprep.subr.mxu1 %v2568_v43  ;;  %v3945_v43 = vand.u32 4294901760, %v2736_v12  ;;  %v3957_v12 = vand.u32 4294901760, %v2876_v37  ;;  %v69_v37 = vld [vmem:[%s3751_s0 + $0x168] sm:$0xff] }
  0x9e   :  { %2176 = vmatpush3.xpose.msra.mxu0 %v3940_v20  ;;  %2206 = vmatpush3.xpose.msra.mxu1 %v2583_v54  ;;  %v3946_v54 = vand.u32 4294901760, %v3911_v49  ;;  %v3128_v49 = vsub.f32 %v284_v8, %v3106_v38  ;;  %v227_v20 = vsel %vm90_vm0, %v68_v24, 0  ;;  %v66_v8 = vld [vmem:[%s3751_s0 + $0x150] sm:$0xff] }
  0x9f   :  { %2177 = vmatprep.subr.mxu0 %v3941_v22  ;;  %2207 = vmatprep.subr.mxu1 %v2602_v62  ;;  %v3949_v62 = vand.u32 4294901760, %v2781_v29  ;;  %v71_v29 = vld [vmem:[%s3751_s0 + $0x178] sm:$0xff] }
  0xa0   :  { %v236_v51 = vsel %vm90_vm0, %v71_v29, 0  ;;  %v3965_v29 = vld [vmem:[#allocation25_spill] sm:$0xff] }
  0xa2   :  { %2178 = vmatpush3.xpose.msra.mxu0 %v3942_v30  ;;  %2208 = vmatpush3.xpose.msra.mxu1 %v2610_v3  ;;  %v3950_v3 = vand.u32 4294901760, %v2809_v39  ;;  %v3956_v39 = vld [vmem:[#allocation14_spill] sm:$0xff] }
  0xa3   :  { %2179 = vmatprep.subr.mxu0 %v3943_v33  ;;  %2209 = vmatprep.subr.mxu1 %v2628_v16  ;;  %v86_v16 = vld [vmem:[%s3751_s0 + $0x1f0] sm:$0xff] }
  0xa4   :  { %v281_v41 = vsel %vm90_vm0, %v86_v16, 0  ;;  %v82_v33 = vld [vmem:[%s3751_s0 + $0x1d0] sm:$0xff] }
  0xa5   :  { %v3124_v34 = vand.u32 4294901760, %v281_v41 }
  0xa6   :  { %2180 = vmatpush3.xpose.msra.mxu0 %v3944_v40  ;;  %2210 = vmatpush3.xpose.msra.mxu1 %v2630_v17  ;;  %v3952_v17 = vld [vmem:[#allocation22_spill] sm:$0xff] }
  0xa7   :  { %2181 = vmatprep.subr.mxu0 %v3945_v43  ;;  %2211 = vmatprep.subr.mxu1 %v3910_v61  ;;  %v3953_v27 = vand.u32 4294901760, %v3952_v17  ;;  %v233_v61 = vsel %vm90_vm0, %v70_v52, 0  ;;  %v3153_v21 = vsub.f32 %v281_v41, %v3124_v34 }
  0xa8   :  { %v3140_v55 = vand.u32 4294901760, %v233_v61 }
  0xa9   :  { %v3829_v15 = vand.u32 4294901760, %v3153_v21 }
  0xaa   :  { %2182 = vmatpush3.xpose.msra.mxu0 %v3946_v54  ;;  %2212 = vmatpush3.xpose.msra.mxu1 %v3912_v14  ;;  %v3959_v14 = vand.u32 4294901760, %v2885_v46  ;;  %v3163_v26 = vsub.f32 %v233_v61, %v3140_v55 }
  0xab   :  { %2183 = vmatprep.subr.mxu0 %v3947_v56  ;;  %2213 = vmatprep.subr.mxu1 %v3914_v6 }
  0xac   :  { %v3828_v43 = vand.u32 4294901760, %v3163_v26 }
  0xae   :  { %2184 = vmatpush3.xpose.msra.mxu0 %v3948_v58  ;;  %2214 = vmatpush3.xpose.msra.mxu1 %v3916_v28  ;;  %v84_v28 = vld [vmem:[%s3751_s0 + $0x1e0] sm:$0xff]  ;;  %v1372_v58 = vsub.f32 %v3153_v21, %v3829_v15 }
  0xaf   :  { %2185 = vmatprep.subr.mxu0 %v3949_v62  ;;  %2215 = vmatprep.subr.mxu1 %v3917_v25  ;;  %v3960_v25 = vld [vmem:[#allocation24_spill] sm:$0xff] }
  0xb0   :  { %v3961_v46 = vand.u32 4294901760, %v3960_v25  ;;  %v1373_v41 = vand.u32 4294901760, %v1372_v58 }
  0xb2   :  { %2186 = vmatpush3.xpose.msra.mxu0 %v3950_v3  ;;  %2216 = vmatpush3.xpose.msra.mxu1 %v3918_v42  ;;  %v3831_v42 = vand.u32 4294901760, %v3128_v49  ;;  %v269_v3 = vsel %vm90_vm0, %v82_v33, 0  ;;  %v79_v33 = vld [vmem:[%s3751_s0 + $0x1b8] sm:$0xff] }
  0xb3   :  { %2187 = vmatprep.subr.mxu0 %v3951_v4  ;;  %2217 = vmatprep.subr.mxu1 %v3919_v45  ;;  %v230_v45 = vsel %vm90_vm0, %v69_v37, 0 }
  0xb4   :  { %v3165_v9 = vand.u32 4294901760, %v230_v45  ;;  %v1365_v35 = vsub.f32 %v3128_v49, %v3831_v42 }
  0xb6   :  { %2188 = vmatpush3.xpose.msra.mxu0 %v3953_v27  ;;  %2218 = vmatpush3.xpose.msra.mxu1 %v2742_v2  ;;  %v3119_v2 = vand.u32 4294901760, %v236_v51  ;;  %v3196_v40 = vsub.f32 %v230_v45, %v3165_v9  ;;  %v1366_v54 = vand.u32 4294901760, %v1365_v35  ;;  %v81_v27 = vld [vmem:[%s3751_s0 + $0x1c8] sm:$0xff] }
  0xb7   :  { %2189 = vmatprep.subr.mxu0 %v3955_v1  ;;  %2219 = vmatprep.subr.mxu1 %v3956_v39  ;;  %v3237_v1 = vand.u32 4294901760, %v269_v3  ;;  %v221_v39 = vsel %vm90_vm0, %v66_v8, 0  ;;  %v266_v61 = vsel %vm90_vm0, %v81_v27, 0  ;;  %v260_v27 = vsel %vm90_vm0, %v79_v33, 0 }
  0xb8   :  { %v3138_v6 = vsub.f32 %v236_v51, %v3119_v2  ;;  %v3824_v17 = vand.u32 4294901760, %v3196_v40  ;;  %v3260_v37 = vand.u32 4294901760, %v221_v39 }
  0xba   :  { %2190 = vmatpush3.xpose.msra.mxu0 %v3957_v12  ;;  %2220 = vmatpush3.xpose.msra.mxu1 %v3958_v7  ;;  %v3830_v10 = vand.u32 4294901760, %v3138_v6  ;;  %v65_v12 = vld [vmem:[%s3751_s0 + $0x148] sm:$0xff]  ;;  %v80_v7 = vld [vmem:[%s3751_s0 + $0x1c0] sm:$0xff] }
  0xbb   :  { %2191 = vmatprep.subr.mxu0 %v3959_v14  ;;  %2221 = vmatprep.subr.mxu1 %v3922_v48  ;;  %v3148_v48 = vand.u32 4294901760, %v278_v36  ;;  %v263_v45 = vsel %vm90_vm0, %v80_v7, 0 }
  0xbc   :  { %v1253_v56 = vsub.f32 %v3138_v6, %v3830_v10 }
  0xbd   :  { %v3180_v22 = vsub.f32 %v278_v36, %v3148_v48  ;;  %v1267_v36 = vsub.f32 %v3196_v40, %v3824_v17 }
  0xbe   :  { %2192 = vmatpush3.xpose.msra.mxu0 %v3961_v46  ;;  %2222 = vmatpush3.xpose.msra.mxu1 %v3923_v57  ;;  %v275_v57 = vsel %vm90_vm0, %v84_v28, 0  ;;  %v1254_v51 = vand.u32 4294901760, %v1253_v56  ;;  %v218_v46 = vsel %vm90_vm0, %v65_v12, 0  ;;  %v78_v12 = vld [vmem:[%s3751_s0 + $0x1b0] sm:$0xff] }
  0xbf   :  { %2193 = vmatprep.subr.mxu0 %v3962_v5  ;;  %2223 = vmatprep.subr.mxu1 %v3963_v23  ;;  %v3184_v30 = vand.u32 4294901760, %v275_v57  ;;  %v3826_v62 = vand.u32 4294901760, %v3180_v22  ;;  %v3270_v5 = vsub.f32 %v269_v3, %v3237_v1  ;;  %v1268_v35 = vand.u32 4294901760, %v1267_v36 }
  0xc1   :  { %v3217_v4 = vsub.f32 %v275_v57, %v3184_v30  ;;  %v1379_v52 = vsub.f32 %v3180_v22, %v3826_v62  ;;  %v3276_v57 = vand.u32 4294901760, %v266_v61  ;;  %v3817_v58 = vand.u32 4294901760, %v3270_v5 }
  0xc2   :  { %2194 = vmatpush3.xpose.msra.mxu0 %v3964_v11  ;;  %2224 = vmatpush3.xpose.msra.mxu1 %v3925_v50  ;;  %v67_v50 = vld [vmem:[%s3751_s0 + $0x158] sm:$0xff]  ;;  %v64_v11 = vld [vmem:[%s3751_s0 + $0x140] sm:$0xff] }
  0xc3   :  { %2225 = vmatprep.subr.mxu1 %v3926_v53  ;;  %2231 = vmatprep.subr.mxu0 %v3106_v38  ;;  %v3198_v53 = vand.u32 4294901760, %v227_v20  ;;  %v3823_v47 = vand.u32 4294901760, %v3217_v4  ;;  %v1380_v23 = vand.u32 4294901760, %v1379_v52  ;;  %v1400_v36 = vsub.f32 %v3270_v5, %v3817_v58 }
  0xc5   :  { %2196 = vmatmul.mubr.msk.f32.vlgmr.msra.gmra.mxu0 %vm90_vm0, %v2887_v31  ;;  %v3224_v16 = vsub.f32 %v227_v20, %v3198_v53  ;;  %v1386_v24 = vsub.f32 %v3217_v4, %v3823_v47  ;;  %v3285_v20 = vsub.f32 %v221_v39, %v3260_v37  ;;  %v1401_v58 = vand.u32 4294901760, %v1400_v36 }
  0xc6   :  { %2226 = vmatpush3.xpose.msra.mxu1 %v2871_v60  ;;  %2232 = vmatpush3.xpose.msra.mxu0 %v3119_v2  ;;  %v224_v60 = vsel %vm90_vm0, %v67_v50, 0  ;;  %v3289_v50 = vand.u32 4294901760, %v263_v45 }
  0xc7   :  { %2227 = vmatprep.subr.mxu1 %v2873_v44  ;;  %2233 = vmatprep.subr.mxu0 %v3124_v34  ;;  %v1260_v44 = vsub.f32 %v3163_v26, %v3828_v43  ;;  %v3235_v59 = vand.u32 4294901760, %v224_v60  ;;  %v3821_v28 = vand.u32 4294901760, %v3224_v16  ;;  %v1387_v3 = vand.u32 4294901760, %v1386_v24 }
  0xc8   :  { %2263 = vmatprep.mubr.f32.mxu0 %v3965_v29  ;;  %3966 = vst [vmem:[#allocation5_spill] sm:$0xff] %v3289_v50  ;;  %v3819_v52 = vand.u32 4294901760, %v3285_v20  ;;  %v3322_v7 = vsub.f32 %v263_v45, %v3289_v50 }
  0xc9   :  { %v1261_v14 = vand.u32 4294901760, %v1260_v44  ;;  %v3265_v25 = vsub.f32 %v224_v60, %v3235_v59  ;;  %v215_v60 = vsel %vm90_vm0, %v64_v11, 0  ;;  %v3306_v44 = vsub.f32 %v266_v61, %v3276_v57 }
  0xca   :  { %2228 = vmatpush3.xpose.msra.mxu1 %v2897_v19  ;;  %2234 = vmatpush3.xpose.msra.mxu0 %v3140_v55  ;;  %v3246_v19 = vsub.f32 %v272_v13, %v3212_v0  ;;  %v3287_v13 = vand.u32 4294901760, %v218_v46  ;;  %v257_v11 = vsel %vm90_vm0, %v78_v12, 0 }
  0xcb   :  { %2235 = vmatprep.subr.mxu0 %v3148_v48  ;;  %2265 = vmatprep.subr.mxu1 %v1366_v54  ;;  %v1274_v54 = vsub.f32 %v3224_v16, %v3821_v28  ;;  %v3818_v56 = vand.u32 4294901760, %v3265_v25  ;;  %v3822_v45 = vand.u32 4294901760, %v3306_v44 }
  0xcc   :  { %v3820_v18 = vand.u32 4294901760, %v3246_v19  ;;  %v3313_v39 = vsub.f32 %v218_v46, %v3287_v13 }
  0xcd   :  { %2230 = vmatmul.mubr.msk.f32.vlgmr.msra.gmra.mxu1 %vm90_vm0, %v2887_v31  ;;  %v1275_v61 = vand.u32 4294901760, %v1274_v54  ;;  %v1288_v54 = vsub.f32 %v3285_v20, %v3819_v52  ;;  %v3358_v52 = vand.u32 4294901760, %v257_v11 }
  0xce   :  { %2236 = vmatpush3.xpose.msra.mxu0 %v3165_v9  ;;  %2266 = vmatpush3.xpose.msra.mxu1 %v1254_v51  ;;  %v1393_v8 = vsub.f32 %v3246_v19, %v3820_v18  ;;  %v63_v51 = vld [vmem:[%s3751_s0 + $0x138] sm:$0xff] }
  0xcf   :  { %2237 = vmatprep.subr.mxu0 %v3184_v30  ;;  %2267 = vmatprep.subr.mxu1 %v1373_v41  ;;  %v3315_v41 = vand.u32 4294901760, %v215_v60  ;;  %v212_v24 = vsel %vm90_vm0, %v63_v51, 0  ;;  %v77_v51 = vld [vmem:[%s3751_s0 + $0x1a8] sm:$0xff]  ;;  %3970 = vst [vmem:[#allocation7_spill] sm:$0xff] %v3358_v52  ;;  %v3391_v43 = vsub.f32 %v257_v11, %v3358_v52 }
  0xd0   :  { %2297 = vmatprep.mubr.msk.f32.mxu1 %vm90_vm0, %v2887_v31  ;;  %v1394_v46 = vand.u32 4294901760, %v1393_v8  ;;  %v3827_v8 = vand.u32 4294901760, %v3322_v7  ;;  %v254_v36 = vsel %vm90_vm0, %v77_v51, 0 }
  0xd1   :  { %3967 = vst [vmem:[#allocation12_spill] sm:$0xff] %v3315_v41  ;;  %v3341_v33 = vsub.f32 %v215_v60, %v3315_v41  ;;  %v1407_v60 = vsub.f32 %v3306_v44, %v3822_v45  ;;  %v3387_v62 = vand.u32 4294901760, %v254_v36  ;;  %3973 = vst [vmem:[#allocation9_spill] sm:$0xff] %v3391_v43 }
  0xd2   :  { %2238 = vmatpush3.xpose.msra.mxu0 %v3198_v53  ;;  %2268 = vmatpush3.xpose.msra.mxu1 %v1261_v14  ;;  %v1281_v14 = vsub.f32 %v3265_v25, %v3818_v56  ;;  %v3352_v56 = vand.u32 4294901760, %v212_v24 }
  0xd3   :  { %2239 = vmatprep.subr.mxu0 %v3212_v0  ;;  %2269 = vmatprep.subr.mxu1 %v1380_v23  ;;  %v3332_v23 = vand.u32 4294901760, %v260_v27  ;;  %3972 = vst [vmem:[#allocation8_spill] sm:$0xff] %v3387_v62 }
  0xd4   :  { %v1282_v12 = vand.u32 4294901760, %v1281_v14  ;;  %3969 = vst [vmem:[#allocation13_spill] sm:$0xff] %v3352_v56  ;;  %v76_v14 = vld [vmem:[%s3751_s0 + $0x1a0] sm:$0xff]  ;;  %v3380_v47 = vsub.f32 %v212_v24, %v3352_v56 }
  0xd5   :  { %3968 = vst [vmem:[#allocation6_spill] sm:$0xff] %v3332_v23  ;;  %v3362_v28 = vsub.f32 %v260_v27, %v3332_v23  ;;  %v1414_v27 = vsub.f32 %v3322_v7, %v3827_v8  ;;  %v251_v51 = vsel %vm90_vm0, %v76_v14, 0  ;;  %v60_v24 = vld [vmem:[%s3751_s0 + $0x120] sm:$0xff] }
  0xd6   :  { %2240 = vmatpush3.xpose.msra.mxu0 %v3235_v59  ;;  %2270 = vmatpush3.xpose.msra.mxu1 %v1268_v35  ;;  %v62_v35 = vld [vmem:[%s3751_s0 + $0x130] sm:$0xff]  ;;  %v3404_v14 = vand.u32 4294901760, %v251_v51  ;;  %v3842_v10 = vand.u32 4294901760, %v3380_v47  ;;  %v203_v42 = vsel %vm90_vm0, %v60_v24, 0 }
  0xd7   :  { %2241 = vmatprep.subr.mxu0 %v3237_v1  ;;  %2271 = vmatprep.subr.mxu1 %v1387_v3  ;;  %v3825_v3 = vand.u32 4294901760, %v3313_v39  ;;  %v209_v18 = vsel %vm90_vm0, %v62_v35, 0  ;;  %v3832_v35 = vand.u32 4294901760, %v3341_v33  ;;  %v3835_v8 = vand.u32 4294901760, %v3362_v28 }
  0xd8   :  { %v3382_v17 = vand.u32 4294901760, %v209_v18  ;;  %3975 = vst [vmem:[#allocation11_spill] sm:$0xff] %v3404_v14  ;;  %v1415_v11 = vand.u32 4294901760, %v1414_v27  ;;  %v3427_v24 = vand.u32 4294901760, %v203_v42 }
  0xd9   :  { %v1295_v45 = vsub.f32 %v3313_v39, %v3825_v3  ;;  %v1408_v3 = vand.u32 4294901760, %v1407_v60 }
  0xda   :  { %2242 = vmatpush3.xpose.msra.mxu0 %v3260_v37  ;;  %2272 = vmatpush3.xpose.msra.mxu1 %v1275_v61  ;;  %v61_v61 = vld [vmem:[%s3751_s0 + $0x128] sm:$0xff]  ;;  %3971 = vst [vmem:[#allocation15_spill] sm:$0xff] %v3382_v17  ;;  %v3408_v15 = vsub.f32 %v209_v18, %v3382_v17  ;;  %v59_v18 = vld [vmem:[%s3751_s0 + $0x118] sm:$0xff]  ;;  %3979 = vst [vmem:[#allocation21_spill] sm:$0xff] %v3427_v24 }
  0xdb   :  { %2243 = vmatprep.subr.mxu0 %v3276_v57  ;;  %2273 = vmatprep.subr.mxu1 %v1394_v46  ;;  %v1289_v46 = vand.u32 4294901760, %v1288_v54  ;;  %v206_v54 = vsel %vm90_vm0, %v61_v61, 0  ;;  %v1296_v61 = vand.u32 4294901760, %v1295_v45  ;;  %v1421_v45 = vsub.f32 %v3362_v28, %v3835_v8 }
  0xdc   :  { %v3402_v60 = vand.u32 4294901760, %v206_v54  ;;  %3976 = vst [vmem:[#allocation17_spill] sm:$0xff] %v3408_v15  ;;  %v3433_v8 = vsub.f32 %v251_v51, %v3404_v14 }
  0xde   :  { %2244 = vmatpush3.xpose.msra.mxu0 %v3287_v13  ;;  %2274 = vmatpush3.xpose.msra.mxu1 %v1282_v12  ;;  %v75_v12 = vld [vmem:[%s3751_s0 + $0x198] sm:$0xff]  ;;  %3974 = vst [vmem:[#allocation10_spill] sm:$0xff] %v3402_v60  ;;  %v3425_v27 = vsub.f32 %v206_v54, %v3402_v60  ;;  %3980 = vst [vmem:[#allocation22_spill] sm:$0xff] %v3433_v8  ;;  %v3453_v54 = vsub.f32 %v203_v42, %v3427_v24 }
  0xdf   :  { %2245 = vmatprep.subr.mxu0 %v3289_v50  ;;  %2275 = vmatprep.subr.mxu1 %v1401_v58  ;;  %v1302_v58 = vsub.f32 %v3341_v33, %v3832_v35  ;;  %v3982_v50 = vand.u32 4294901760, %v3391_v43 }
  0xe0   :  { %3978 = vst [vmem:[#allocation20_spill] sm:$0xff] %v3425_v27  ;;  %3983 = vst [vmem:[#allocation14_spill] sm:$0xff] %v3453_v54 }
  0xe1   :  { %v1428_v51 = vsub.f32 %v3391_v43, %v3982_v50  ;;  %v73_v50 = vld [vmem:[%s3751_s0 + $0x188] sm:$0xff] }
  0xe2   :  { %2246 = vmatpush3.xpose.msra.mxu0 %v3315_v41  ;;  %2276 = vmatpush3.xpose.msra.mxu1 %v1289_v46  ;;  %v248_v41 = vsel %vm90_vm0, %v75_v12, 0  ;;  %v3419_v46 = vsub.f32 %v254_v36, %v3387_v62  ;;  %v1303_v36 = vand.u32 4294901760, %v1302_v58  ;;  %v1309_v12 = vsub.f32 %v3380_v47, %v3842_v10  ;;  %v58_v10 = vld [vmem:[%s3751_s0 + $0x110] sm:$0xff] }
  0xe3   :  { %2247 = vmatprep.subr.mxu0 %v3332_v23  ;;  %2277 = vmatprep.subr.mxu1 %v1408_v3  ;;  %v74_v3 = vld [vmem:[%s3751_s0 + $0x190] sm:$0xff]  ;;  %v3440_v35 = vand.u32 4294901760, %v248_v41  ;;  %v1422_v23 = vand.u32 4294901760, %v1421_v45  ;;  %v1429_v45 = vand.u32 4294901760, %v1428_v51 }
  0xe4   :  { %3977 = vst [vmem:[#allocation18_spill] sm:$0xff] %v3419_v46  ;;  %v245_v58 = vsel %vm90_vm0, %v74_v3, 0  ;;  %v3984_v3 = vand.u32 4294901760, %v3408_v15 }
  0xe5   :  { %3981 = vst [vmem:[#allocation23_spill] sm:$0xff] %v3440_v35  ;;  %v3467_v42 = vsub.f32 %v248_v41, %v3440_v35  ;;  %v3989_v41 = vand.u32 4294901760, %v3425_v27 }
  0xe6   :  { %2248 = vmatpush3.xpose.msra.mxu0 %v3352_v56  ;;  %2278 = vmatpush3.xpose.msra.mxu1 %v1296_v61  ;;  %v200_v61 = vsel %vm90_vm0, %v59_v18, 0  ;;  %v1310_v18 = vand.u32 4294901760, %v1309_v12  ;;  %v1316_v56 = vsub.f32 %v3408_v15, %v3984_v3  ;;  %v242_v12 = vsel %vm90_vm0, %v73_v50, 0  ;;  %v57_v3 = vld [vmem:[%s3751_s0 + $0x108] sm:$0xff] }
  0xe7   :  { %2249 = vmatprep.subr.mxu0 %v3358_v52  ;;  %2279 = vmatprep.subr.mxu1 %v1415_v11  ;;  %v3464_v52 = vand.u32 4294901760, %v200_v61  ;;  %3986 = vst [vmem:[#allocation24_spill] sm:$0xff] %v3467_v42  ;;  %v3987_v11 = vand.u32 4294901760, %v3419_v46 }
  0xe8   :  { %v1317_v50 = vand.u32 4294901760, %v1316_v56 }
  0xe9   :  { %3985 = vst [vmem:[#allocation16_spill] sm:$0xff] %v3464_v52  ;;  %v1435_v43 = vsub.f32 %v3419_v46, %v3987_v11  ;;  %v3492_v46 = vsub.f32 %v200_v61, %v3464_v52  ;;  %v3498_v11 = vand.u32 4294901760, %v242_v12  ;;  %v56_v61 = vld [vmem:[%s3751_s0 + $0x100] sm:$0xff] }
  0xea   :  { %2250 = vmatpush3.xpose.msra.mxu0 %v3382_v17  ;;  %2280 = vmatpush3.xpose.msra.mxu1 %v1303_v36  ;;  %v3473_v17 = vand.u32 4294901760, %v245_v58  ;;  %v197_v36 = vsel %vm90_vm0, %v58_v10, 0  ;;  %v72_v10 = vld [vmem:[%s3751_s0 + $0x180] sm:$0xff]  ;;  %s2460_s0 = smov [#allocation2]  }
  0xeb   :  { %2251 = vmatprep.subr.mxu0 %v3387_v62  ;;  %2281 = vmatprep.subr.mxu1 %v1422_v23  ;;  %v1323_v62 = vsub.f32 %v3425_v27, %v3989_v41  ;;  %v3990_v23 = vand.u32 4294901760, %v3433_v8  ;;  %v3494_v15 = vand.u32 4294901760, %v197_v36  ;;  %v239_v56 = vsel %vm90_vm0, %v72_v10, 0  ;;  %s2012_s18 = sshll.u32 %s2460_s0, 4  ;;  %s2013_s18 = int_to_ptr.vmem [resolvable:$true] %s2012_s18 }
  0xec   :  { %3988 = vst [vmem:[#allocation19_spill] sm:$0xff] %v3473_v17  ;;  %v3502_v27 = vsub.f32 %v245_v58, %v3473_v17  ;;  %v3991_v41 = vand.u32 4294901760, %v3453_v54  ;;  %v3992_v58 = vand.u32 4294901760, %v3467_v42  ;;  %s2437_s19 = scalar_lea.vmem %s2013_s18, 256  ;;  %p2442_p1 = scmp.lt.s32.totalorder %s2013_s18, %s2013_s18 }
  0xed   :  { %v1442_v51 = vsub.f32 %v3433_v8, %v3990_v23  ;;  %v1436_v23 = vand.u32 4294901760, %v1435_v43  ;;  %v194_v8 = vsel %vm90_vm0, %v57_v3, 0  ;;  %v3513_v43 = vsub.f32 %v197_v36, %v3494_v15  ;;  %p2438_p0 = scmp.ne.s32.totalorder %s2013_s18, %s2437_s19  ;;  %p2443_p2 = scmp.lt.s32.totalorder %s2437_s19, %s2437_s19 }
  0xee   :  { %2252 = vmatpush3.xpose.msra.mxu0 %v3402_v60  ;;  %2282 = vmatpush3.xpose.msra.mxu1 %v1310_v18  ;;  %v1324_v18 = vand.u32 4294901760, %v1323_v62  ;;  %v1449_v3 = vsub.f32 %v3467_v42, %v3992_v58  ;;  %v3518_v10 = vand.u32 4294901760, %v194_v8  ;;  %v3522_v62 = vand.u32 4294901760, %v239_v56 }
  0xef   :  { %2253 = vmatprep.subr.mxu0 %v3404_v14  ;;  %2283 = vmatprep.subr.mxu1 %v1429_v45  ;;  %v1443_v60 = vand.u32 4294901760, %v1442_v51  ;;  %v1330_v45 = vsub.f32 %v3453_v54, %v3991_v41  ;;  %v3865_v14 = vand.u32 4294901760, %v3492_v46  ;;  %v3527_v36 = vsub.f32 %v242_v12, %v3498_v11  ;;  %p2444_p3 = por %p2443_p2, %p2442_p1 }
  0xf0   :  { %v3531_v58 = vsub.f32 %v194_v8, %v3518_v10  ;;  %v3868_v51 = vand.u32 4294901760, %v3513_v43  ;;  %v1450_v12 = vand.u32 4294901760, %v1449_v3  ;;  %v3545_v8 = vsub.f32 %v239_v56, %v3522_v62 }
  0xf1   :  { %v1331_v41 = vand.u32 4294901760, %v1330_v45  ;;  %p2445_p4 = pnand %p2444_p3, %p2438_p0 }
  0xf2   :  { %2254 = vmatpush3.xpose.msra.mxu0 %v3427_v24  ;;  %2284 = vmatpush3.xpose.msra.mxu1 %v1317_v50  ;;  %v191_v50 = vsel %vm90_vm0, %v56_v61, 0  ;;  %3993 = vst [vmem:[#allocation25_spill] sm:$0xff] %v3531_v58  ;;  %v3994_v61 = vand.u32 4294901760, %v3502_v27  ;;  %v3872_v3 = vand.u32 4294901760, %v3531_v58 }
  0xf3   :  { %2255 = vmatprep.subr.mxu0 %v3440_v35  ;;  %2285 = vmatprep.subr.mxu1 %v1436_v23  ;;  %v1337_v23 = vsub.f32 %v3492_v46, %v3865_v14  ;;  %v3536_v35 = vand.u32 4294901760, %v191_v50 }
  0xf4   :  { %v1456_v45 = vsub.f32 %v3502_v27, %v3994_v61 }
  0xf5   :  { %v1338_v14 = vand.u32 4294901760, %v1337_v23  ;;  %v1351_v23 = vsub.f32 %v3531_v58, %v3872_v3  ;;  %v4007_v3 = vld [vmem:[#allocation10_spill] sm:$0xff] }
  0xf6   :  { %2256 = vmatpush3.xpose.msra.mxu0 %v3464_v52  ;;  %2286 = vmatpush3.xpose.msra.mxu1 %v1324_v18  ;;  %v3869_v18 = vand.u32 4294901760, %v3527_v36  ;;  %v3549_v52 = vsub.f32 %v191_v50, %v3536_v35  ;;  %v1457_v61 = vand.u32 4294901760, %v1456_v45 }
  0xf7   :  { %2257 = vmatprep.subr.mxu0 %v3473_v17  ;;  %2287 = vmatprep.subr.mxu1 %v1443_v60  ;;  %v1344_v60 = vsub.f32 %v3513_v43, %v3868_v51 }
  0xf8   :  { %v1463_v56 = vsub.f32 %v3527_v36, %v3869_v18  ;;  %v3870_v51 = vand.u32 4294901760, %v3549_v52  ;;  %v1352_v18 = vand.u32 4294901760, %v1351_v23  ;;  %v3999_v23 = vld [vmem:[#allocation18_spill] sm:$0xff] }
  0xf9   :  { %v1345_v50 = vand.u32 4294901760, %v1344_v60 }
  0xfa   :  { %2258 = vmatpush3.xpose.msra.mxu0 %v3494_v15  ;;  %2288 = vmatpush3.xpose.msra.mxu1 %v1331_v41  ;;  %v3871_v41 = vand.u32 4294901760, %v3545_v8 }
  0xfb   :  { %2259 = vmatprep.subr.mxu0 %v3498_v11  ;;  %2289 = vmatprep.subr.mxu1 %v1450_v12  ;;  %v1464_v12 = vand.u32 4294901760, %v1463_v56  ;;  %v3997_v56 = vld [vmem:[#allocation17_spill] sm:$0xff] }
  0xfc   :  { %v1470_v45 = vsub.f32 %v3545_v8, %v3871_v41  ;;  %v4006_v41 = vld [vmem:[#allocation8_spill] sm:$0xff] }
  0xfe   :  { %2260 = vmatpush3.xpose.msra.mxu0 %v3518_v10  ;;  %2290 = vmatpush3.xpose.msra.mxu1 %v1338_v14  ;;  %v1358_v14 = vsub.f32 %v3549_v52, %v3870_v51  ;;  %v1471_v60 = vand.u32 4294901760, %v1470_v45  ;;  %v4001_v45 = vld [vmem:[#allocation20_spill] sm:$0xff]  ;;  %v4005_v51 = vld [vmem:[#allocation15_spill] sm:$0xff] }
  0xff   :  { %2261 = vmatprep.subr.mxu0 %v3522_v62  ;;  %2291 = vmatprep.subr.mxu1 %v1457_v61 }
 0x100   :  { %v1359_v61 = vand.u32 4294901760, %v1358_v14  ;;  %v4002_v14 = vld [vmem:[#allocation13_spill] sm:$0xff] }
 0x102   :  { %2262 = vmatpush3.xpose.msra.mxu0 %v3536_v35  ;;  %2292 = vmatpush3.xpose.msra.mxu1 %v1345_v50  ;;  %v3998_v50 = vld [vmem:[#allocation12_spill] sm:$0xff] }
 0x103   :  { %2293 = vmatprep.subr.mxu1 %v1464_v12  ;;  %2299 = vmatprep.subr.mxu0 %v3128_v49  ;;  %v4000_v12 = vld [vmem:[#allocation6_spill] sm:$0xff] }
 0x105   :  { %2264 = vmatmul.mubr.f32.vlgmr.msra.gmra.mxu0 %v3965_v29  ;;  %v3995_v29 = vld [vmem:[#allocation9_spill] sm:$0xff] }
 0x106   :  { %2294 = vmatpush3.xpose.msra.mxu1 %v1352_v18  ;;  %2300 = vmatpush3.xpose.msra.mxu0 %v3138_v6  ;;  %v3996_v18 = vld [vmem:[#allocation5_spill] sm:$0xff] }
 0x107   :  { %2295 = vmatprep.subr.mxu1 %v1471_v60  ;;  %2301 = vmatprep.subr.mxu0 %v3153_v21  ;;  %v4003_v60 = vld [vmem:[#allocation22_spill] sm:$0xff] }
 0x108   :  { %2331 = vmatprep.mubr.f32.mxu0 %v2900_v32 }
 0x10a   :  { %2296 = vmatpush3.xpose.msra.mxu1 %v1359_v61  ;;  %2302 = vmatpush3.xpose.msra.mxu0 %v3163_v26  ;;  %v4004_v61 = vld [vmem:[#allocation7_spill] sm:$0xff] }
 0x10b   :  { %2303 = vmatprep.subr.mxu0 %v3180_v22  ;;  %2333 = vmatprep.subr.mxu1 %v3106_v38 }
 0x10d   :  { %2298 = vmatmul.mubr.msk.f32.vlgmr.msra.gmra.mxu1 %vm90_vm0, %v2887_v31 }
 0x10e   :  { %2304 = vmatpush3.xpose.msra.mxu0 %v3196_v40  ;;  %2334 = vmatpush3.xpose.msra.mxu1 %v3119_v2 }
 0x10f   :  { %2305 = vmatprep.subr.mxu0 %v3217_v4  ;;  %2335 = vmatprep.subr.mxu1 %v3124_v34 }
 0x110   :  { %2365 = vmatprep.mubr.f32.mxu1 %v2914_v63 }
 0x112   :  { %2306 = vmatpush3.xpose.msra.mxu0 %v3224_v16  ;;  %2336 = vmatpush3.xpose.msra.mxu1 %v3140_v55 }
 0x113   :  { %2307 = vmatprep.subr.mxu0 %v3246_v19  ;;  %2337 = vmatprep.subr.mxu1 %v3148_v48 }
 0x116   :  { %2308 = vmatpush3.xpose.msra.mxu0 %v3265_v25  ;;  %2338 = vmatpush3.xpose.msra.mxu1 %v3165_v9 }
 0x117   :  { %2309 = vmatprep.subr.mxu0 %v3270_v5  ;;  %2339 = vmatprep.subr.mxu1 %v3184_v30 }
 0x11a   :  { %2310 = vmatpush3.xpose.msra.mxu0 %v3285_v20  ;;  %2340 = vmatpush3.xpose.msra.mxu1 %v3198_v53 }
 0x11b   :  { %2311 = vmatprep.subr.mxu0 %v3306_v44  ;;  %2341 = vmatprep.subr.mxu1 %v3212_v0 }
 0x11e   :  { %2312 = vmatpush3.xpose.msra.mxu0 %v3313_v39  ;;  %2342 = vmatpush3.xpose.msra.mxu1 %v3235_v59 }
 0x11f   :  { %2313 = vmatprep.subr.mxu0 %v3322_v7  ;;  %2343 = vmatprep.subr.mxu1 %v3237_v1 }
 0x122   :  { %2314 = vmatpush3.xpose.msra.mxu0 %v3341_v33  ;;  %2344 = vmatpush3.xpose.msra.mxu1 %v3260_v37 }
 0x123   :  { %2315 = vmatprep.subr.mxu0 %v3362_v28  ;;  %2345 = vmatprep.subr.mxu1 %v3276_v57 }
 0x126   :  { %2316 = vmatpush3.xpose.msra.mxu0 %v3380_v47  ;;  %2346 = vmatpush3.xpose.msra.mxu1 %v3287_v13 }
 0x127   :  { %2317 = vmatprep.subr.mxu0 %v3995_v29  ;;  %2347 = vmatprep.subr.mxu1 %v3996_v18 }
 0x12a   :  { %2318 = vmatpush3.xpose.msra.mxu0 %v3997_v56  ;;  %2348 = vmatpush3.xpose.msra.mxu1 %v3998_v50 }
 0x12b   :  { %2319 = vmatprep.subr.mxu0 %v3999_v23  ;;  %2349 = vmatprep.subr.mxu1 %v4000_v12 }
 0x12e   :  { %2320 = vmatpush3.xpose.msra.mxu0 %v4001_v45  ;;  %2350 = vmatpush3.xpose.msra.mxu1 %v4002_v14  ;;  %v4008_v45 = vld [vmem:[#allocation11_spill] sm:$0xff] }
 0x12f   :  { %2321 = vmatprep.subr.mxu0 %v4003_v60  ;;  %2351 = vmatprep.subr.mxu1 %v4004_v61 }
 0x132   :  { %2322 = vmatpush3.xpose.msra.mxu0 %v3453_v54  ;;  %2352 = vmatpush3.xpose.msra.mxu1 %v4005_v51  ;;  %v4009_v54 = vld [vmem:[#allocation23_spill] sm:$0xff] }
 0x133   :  { %2323 = vmatprep.subr.mxu0 %v3467_v42  ;;  %2353 = vmatprep.subr.mxu1 %v4006_v41  ;;  %v4010_v42 = vld [vmem:[#allocation16_spill] sm:$0xff] }
 0x136   :  { %2324 = vmatpush3.xpose.msra.mxu0 %v3492_v46  ;;  %2354 = vmatpush3.xpose.msra.mxu1 %v4007_v3 }
 0x137   :  { %2325 = vmatprep.subr.mxu0 %v3502_v27  ;;  %2355 = vmatprep.subr.mxu1 %v4008_v45 }
 0x13a   :  { %2326 = vmatpush3.xpose.msra.mxu0 %v3513_v43  ;;  %2356 = vmatpush3.xpose.msra.mxu1 %v3427_v24  ;;  %v4011_v24 = vand.u32 4294901760, %v3128_v49  ;;  %v4014_v49 = vand.u32 4294901760, %v3163_v26  ;;  %v4018_v26 = vand.u32 4294901760, %v3224_v16  ;;  %v4032_v16 = vld [vmem:[#allocation20_spill] sm:$0xff] }
 0x13b   :  { %2327 = vmatprep.subr.mxu0 %v3527_v36  ;;  %2357 = vmatprep.subr.mxu1 %v4009_v54 }
 0x13e   :  { %2328 = vmatpush3.xpose.msra.mxu0 %v3531_v58  ;;  %2358 = vmatpush3.xpose.msra.mxu1 %v4010_v42  ;;  %v4012_v58 = vand.u32 4294901760, %v3138_v6  ;;  %v4016_v6 = vand.u32 4294901760, %v3196_v40  ;;  %v4028_v40 = vand.u32 4294901760, %v3380_v47 }
 0x13f   :  { %2329 = vmatprep.subr.mxu0 %v3545_v8  ;;  %2359 = vmatprep.subr.mxu1 %v3473_v17  ;;  %v4013_v17 = vand.u32 4294901760, %v3153_v21  ;;  %v4017_v21 = vand.u32 4294901760, %v3217_v4  ;;  %v4031_v4 = vand.u32 4294901760, %v3999_v23 }
 0x142   :  { %2330 = vmatpush3.xpose.msra.mxu0 %v3549_v52  ;;  %2360 = vmatpush3.xpose.msra.mxu1 %v3494_v15 }
 0x143   :  { %2361 = vmatprep.subr.mxu1 %v3498_v11  ;;  %2367 = vmatprep.subr.mxu0 %v4011_v24 }
 0x145   :  { %2332 = vmatmul.mubr.f32.vlgmr.msra.gmra.mxu0 %v2900_v32  ;;  %v4015_v32 = vand.u32 4294901760, %v3180_v22  ;;  %v4026_v22 = vand.u32 4294901760, %v3341_v33  ;;  %v621_v33 = vpop.f32.mrf.mxu1 }
 0x146   :  { %2362 = vmatpush3.xpose.msra.mxu1 %v3518_v10  ;;  %2368 = vmatpush3.xpose.msra.mxu0 %v4012_v58 }
 0x147   :  { %2363 = vmatprep.subr.mxu1 %v3522_v62  ;;  %2369 = vmatprep.subr.mxu0 %v4013_v17  ;;  %v4033_v17 = vand.u32 4294901760, %v4032_v16 }
 0x148   :  { %2399 = vmatprep.mubr.msk.f32.mxu0 %vm90_vm0, %v2887_v31 }
 0x14a   :  { %2364 = vmatpush3.xpose.msra.mxu1 %v3536_v35  ;;  %2370 = vmatpush3.xpose.msra.mxu0 %v4014_v49 }
 0x14b   :  { %2371 = vmatprep.subr.mxu0 %v4015_v32  ;;  %2401 = vmatprep.subr.mxu1 %v3106_v38  ;;  %v4020_v38 = vand.u32 4294901760, %v3265_v25  ;;  %v4040_v25 = vand.u32 4294901760, %v3502_v27  ;;  %v4047_v27 = vld [vmem:[#allocation19_spill] sm:$0xff] }
 0x14d   :  { %2366 = vmatmul.mubr.f32.vlgmr.msra.gmra.mxu1 %v2914_v63  ;;  %v4019_v63 = vand.u32 4294901760, %v3246_v19  ;;  %v4037_v19 = vld [vmem:[#allocation24_spill] sm:$0xff] }
 0x14e   :  { %2372 = vmatpush3.xpose.msra.mxu0 %v4016_v6  ;;  %2402 = vmatpush3.xpose.msra.mxu1 %v3119_v2  ;;  %v4021_v2 = vand.u32 4294901760, %v3270_v5  ;;  %v4041_v5 = vand.u32 4294901760, %v3513_v43  ;;  %v4048_v43 = vand.u32 4294901760, %v3549_v52 }
 0x14f   :  { %2373 = vmatprep.subr.mxu0 %v4017_v21  ;;  %2403 = vmatprep.subr.mxu1 %v3124_v34  ;;  %v4022_v34 = vand.u32 4294901760, %v3285_v20  ;;  %v389_v20 = vpop.f32.mrf.mxu0 }
 0x150   :  { %2433 = vmatprep.mubr.msk.f32.mxu1 %vm90_vm0, %v2887_v31  ;;  %v622_v58 = vadd.f32 %v621_v33, %v389_v20 }
 0x152   :  { %2374 = vmatpush3.xpose.msra.mxu0 %v4018_v26  ;;  %2404 = vmatpush3.xpose.msra.mxu1 %v3140_v55  ;;  %v4023_v55 = vand.u32 4294901760, %v3306_v44  ;;  %v4044_v44 = vld [vmem:[#allocation25_spill] sm:$0xff] }
 0x153   :  { %2375 = vmatprep.subr.mxu0 %v4019_v63  ;;  %2405 = vmatprep.subr.mxu1 %v3148_v48  ;;  %v4024_v48 = vand.u32 4294901760, %v3313_v39  ;;  %v4045_v39 = vand.u32 4294901760, %v4044_v44 }
 0x156   :  { %2376 = vmatpush3.xpose.msra.mxu0 %v4020_v38  ;;  %2406 = vmatpush3.xpose.msra.mxu1 %v3165_v9  ;;  %v4025_v9 = vand.u32 4294901760, %v3322_v7  ;;  %v391_v7 = vpop.f32.mrf.mxu0 }
 0x157   :  { %2377 = vmatprep.subr.mxu0 %v4021_v2  ;;  %2407 = vmatprep.subr.mxu1 %v3184_v30  ;;  %v4027_v30 = vand.u32 4294901760, %v3362_v28  ;;  %v4039_v28 = vand.u32 4294901760, %v3492_v46  ;;  %v4046_v46 = vand.u32 4294901760, %v3545_v8 }
 0x158   :  { %v758_v24 = vpop.f32.mrf.mxu0 }
 0x159   :  { %v759_v52 = vadd.f32 %v758_v24, %v622_v58 }
 0x15a   :  { %2378 = vmatpush3.xpose.msra.mxu0 %v4022_v34  ;;  %2408 = vmatpush3.xpose.msra.mxu1 %v3198_v53  ;;  %v4029_v53 = vand.u32 4294901760, %v3995_v29 }
 0x15b   :  { %2379 = vmatprep.subr.mxu0 %v4023_v55  ;;  %2409 = vmatprep.subr.mxu1 %v3212_v0  ;;  %v4030_v0 = vand.u32 4294901760, %v3997_v56 }
 0x15e   :  { %2380 = vmatpush3.xpose.msra.mxu0 %v4024_v48  ;;  %2410 = vmatpush3.xpose.msra.mxu1 %v3235_v59  ;;  %v4034_v59 = vand.u32 4294901760, %v4003_v60 }
 0x15f   :  { %2381 = vmatprep.subr.mxu0 %v4025_v9  ;;  %2411 = vmatprep.subr.mxu1 %v3237_v1  ;;  %v4035_v1 = vld [vmem:[#allocation14_spill] sm:$0xff] }
 0x160   :  { %v4036_v47 = vand.u32 4294901760, %v4035_v1 }
 0x162   :  { %2382 = vmatpush3.xpose.msra.mxu0 %v4026_v22  ;;  %2412 = vmatpush3.xpose.msra.mxu1 %v3260_v37  ;;  %v4038_v37 = vand.u32 4294901760, %v4037_v19 }
 0x163   :  { %2383 = vmatprep.subr.mxu0 %v4027_v30  ;;  %2413 = vmatprep.subr.mxu1 %v3276_v57  ;;  %v4042_v57 = vld [vmem:[#allocation21_spill] sm:$0xff] }
 0x166   :  { %2384 = vmatpush3.xpose.msra.mxu0 %v4028_v40  ;;  %2414 = vmatpush3.xpose.msra.mxu1 %v3287_v13  ;;  %v4043_v13 = vand.u32 4294901760, %v3527_v36 }
 0x167   :  { %2385 = vmatprep.subr.mxu0 %v4029_v53  ;;  %2415 = vmatprep.subr.mxu1 %v3996_v18 }
 0x16a   :  { %2386 = vmatpush3.xpose.msra.mxu0 %v4030_v0  ;;  %2416 = vmatpush3.xpose.msra.mxu1 %v3998_v50 }
 0x16b   :  { %2387 = vmatprep.subr.mxu0 %v4031_v4  ;;  %2417 = vmatprep.subr.mxu1 %v4000_v12 }
 0x16e   :  { %2388 = vmatpush3.xpose.msra.mxu0 %v4033_v17  ;;  %2418 = vmatpush3.xpose.msra.mxu1 %v4002_v14 }
 0x16f   :  { %2389 = vmatprep.subr.mxu0 %v4034_v59  ;;  %2419 = vmatprep.subr.mxu1 %v4004_v61 }
 0x172   :  { %2390 = vmatpush3.xpose.msra.mxu0 %v4036_v47  ;;  %2420 = vmatpush3.xpose.msra.mxu1 %v4005_v51  ;;  %v623_v51 = vpop.f32.mrf.mxu1 }
 0x173   :  { %2391 = vmatprep.subr.mxu0 %v4038_v37  ;;  %2421 = vmatprep.subr.mxu1 %v4006_v41  ;;  %v624_v8 = vadd.f32 %v623_v51, %v391_v7 }
 0x174   :  { %v864_v36 = vpop.f32.mrf.mxu1 }
 0x175   :  { %v865_v29 = vadd.f32 %v864_v36, %v759_v52 }
 0x176   :  { %2392 = vmatpush3.xpose.msra.mxu0 %v4039_v28  ;;  %2422 = vmatpush3.xpose.msra.mxu1 %v4007_v3  ;;  %v866_v3 = vpop.f32.mrf.mxu1 }
 0x177   :  { %2393 = vmatprep.subr.mxu0 %v4040_v25  ;;  %2423 = vmatprep.subr.mxu1 %v4008_v45 }
 0x17a   :  { %2394 = vmatpush3.xpose.msra.mxu0 %v4041_v5  ;;  %2424 = vmatpush3.xpose.msra.mxu1 %v4042_v57 }
 0x17b   :  { %2395 = vmatprep.subr.mxu0 %v4043_v13  ;;  %2425 = vmatprep.subr.mxu1 %v4009_v54  ;;  %v760_v54 = vpop.f32.mrf.mxu0 }
 0x17c   :  { %v761_v41 = vadd.f32 %v760_v54, %v624_v8 }
 0x17e   :  { %2396 = vmatpush3.xpose.msra.mxu0 %v4045_v39  ;;  %2426 = vmatpush3.xpose.msra.mxu1 %v4010_v42 }
 0x17f   :  { %2397 = vmatprep.subr.mxu0 %v4046_v46  ;;  %2427 = vmatprep.subr.mxu1 %v4047_v27 }
 0x182   :  { %2398 = vmatpush3.xpose.msra.mxu0 %v4048_v43  ;;  %2428 = vmatpush3.xpose.msra.mxu1 %v3494_v15 }
 0x183   :  { %2429 = vmatprep.subr.mxu1 %v3498_v11  ;;  %v867_v11 = vadd.f32 %v866_v3, %v761_v41 }
 0x185   :  { %2400 = vmatmul.mubr.msk.f32.vlgmr.msra.gmra.mxu0 %vm90_vm0, %v2887_v31  ;;  %v1032_v42 = vpop.f32.mrf.mxu0 }
 0x186   :  { %2430 = vmatpush3.xpose.msra.mxu1 %v3518_v10  ;;  %v1033_v56 = vadd.f32 %v1032_v42, %v865_v29 }
 0x187   :  { %2431 = vmatprep.subr.mxu1 %v3522_v62  ;;  %v1034_v15 = vpop.f32.mrf.mxu0 }
 0x188   :  { %v1035_v50 = vadd.f32 %v1034_v15, %v867_v11 }
 0x18a   :  { %2432 = vmatpush3.xpose.msra.mxu1 %v3536_v35 }
 0x18d   :  { %v1136_v18 = vpop.f32.mrf.mxu1  ;;  %2434 = vmatmul.mubr.msk.f32.vlgmr.msra.gmra.mxu1 %vm90_vm0, %v2887_v31 }
 0x18e   :  { %v1137_v23 = vadd.f32 %v1136_v18, %v1033_v56 }
 0x18f   :  { %v1138_v10 = vpop.f32.mrf.mxu1 }
 0x190   :  { %v1139_v12 = vadd.f32 %v1138_v10, %v1035_v50 }
 0x192   :  { %v2000_v62 = vcombine.low %v1137_v23, %v1139_v12 }
 0x194   :  { %2004 = vst [vmem:[#allocation2] sm:$0x77] %v2000_v62 }
 0x1c5   :  { %v1244_v45 = vpop.f32.mrf.mxu0 }
 0x1c7   :  { %v1246_v14 = vpop.f32.mrf.mxu0 }
 0x1cd   :  { %v1476_v60 = vpop.f32.mrf.mxu1 }
 0x1ce   :  { %v1477_v21 = vadd.f32 %v1476_v60, %v1244_v45 }
 0x1cf   :  { %v1478_v49 = vpop.f32.mrf.mxu1 }
 0x1d0   :  { %v1479_v26 = vadd.f32 %v1478_v49, %v1246_v14 }
 0x205   :  { %v1613_v61 = vpop.f32.mrf.mxu0 }
 0x206   :  { %v1614_v38 = vadd.f32 %v1613_v61, %v1477_v21 }
 0x207   :  { %v1615_v35 = vpop.f32.mrf.mxu0 }
 0x208   :  { %v1616_v31 = vadd.f32 %v1615_v35, %v1479_v26 }
 0x20d   :  { %v1719_v32 = vpop.f32.mrf.mxu1 }
 0x20e   :  { %v1720_v34 = vadd.f32 %v1719_v32, %v1614_v38 }
 0x20f   :  { %v1721_v63 = vpop.f32.mrf.mxu1 }
 0x210   :  { %v1722_v55 = vadd.f32 %v1721_v63, %v1616_v31 }
 0x245   :  { %v1887_v6 = vpop.f32.mrf.mxu0 }
 0x246   :  { %v1888_v9 = vadd.f32 %v1887_v6, %v1720_v34 }
 0x247   :  { %v1889_v2 = vpop.f32.mrf.mxu0 }
 0x248   :  { %v1890_v22 = vadd.f32 %v1889_v2, %v1722_v55 }
 0x24d   :  { %v1991_v48 = vpop.f32.mrf.mxu1 }
 0x24e   :  { %v1992_v40 = vadd.f32 %v1991_v48, %v1888_v9 }
 0x24f   :  { %v1993_v30 = vpop.f32.mrf.mxu1 }
 0x250   :  { %v1994_v53 = vadd.f32 %v1993_v30, %v1890_v22 }
 0x252   :  { %v2001_v0 = vcombine.low %v1992_v40, %v1994_v53 }
 0x254   :  { %2005 = vst [vmem:[#allocation2 + $0x8] sm:$0x77] %v2001_v0 }
 0x255   :  { %2448 = shalt.err (!%p2445_p4)
}
 0x256   :  { %2015 = dma.vmem_to_hbm [thread:$0]  %s2013_s18, 256, %s3752_s1, [#allocation3]  }
 0x257   :  { %2457 = dma.done.wait [#allocation3], 256  }
 0x258   :  { %2458 = vsyncadd [#allocation3], 4294967040 }
 0x259   :  { %2019 = vsyncpa [#allocation3], 1 }

</bundles_post_ra>
